<compile_context>
chip_gen: v5e
topology: v5e:2x2
jax: 0.10.0
libtpu: 0.0.40
codegen_flags: <defaults>
</compile_context>

<pallas_src>
import jax
import jax.numpy as jnp
from jax.experimental import pallas as pl
from jax.experimental.pallas import tpu as pltpu


def _sae_kernel(x_ref, w_enc_ref, w_dec_ref, b_enc_ref, b_dec_ref,
                x_rec_ref, acts_ref, loss_ref, l1_acc_ref):
    h = pl.program_id(1)
    nh = pl.num_programs(1)
    w_dtype = w_enc_ref.dtype

    @pl.when(h == 0)
    def _init():
        # x_rec output block is resident across the hidden axis -> use it as
        # the decoder accumulator directly (no separate scratch).
        x_rec_ref[...] = jnp.zeros_like(x_rec_ref)
        l1_acc_ref[...] = jnp.zeros_like(l1_acc_ref)

    # Encoder column tile: (tb, d_in) @ (d_in, th) on the MXU.
    # b_dec is already folded into b_enc_eff by the wrapper, so x is used as-is.
    pre = jnp.dot(x_ref[...].astype(w_dtype), w_enc_ref[...],
                  preferred_element_type=jnp.float32) + b_enc_ref[...]
    acts = jnp.maximum(pre, 0.0)                          # ReLU (f32)
    acts_ref[...] = acts.astype(acts_ref.dtype)

    # |acts| == acts after ReLU; accumulate per-row L1 partials across h tiles.
    l1_acc_ref[...] += jnp.sum(acts, axis=-1, keepdims=True)

    # Decoder partial product: (tb, th) @ (th, d_in), accumulated in-place in
    # the resident f32 output block.
    x_rec_ref[...] += jnp.dot(acts.astype(w_dtype), w_dec_ref[...],
                              preferred_element_type=jnp.float32)

    @pl.when(h == nh - 1)
    def _finalize():
        x_rec = x_rec_ref[...] + b_dec_ref[...]
        x_rec_ref[...] = x_rec
        diff = x_rec - x_ref[...]
        l2_rows = jnp.sum(diff * diff, axis=-1, keepdims=True)
        # Pack per-row l2 (lane 0) and l1 (lane 1) into one lane-dense block.
        lane = jax.lax.broadcasted_iota(jnp.int32, loss_ref.shape, 1)
        loss_ref[...] = jnp.where(lane == 0, l2_rows,
                                  jnp.where(lane == 1, l1_acc_ref[...], 0.0))


def _round_up(n, m):
    return ((n + m - 1) // m) * m


def _vmem_limit_bytes():
    """Chip-aware scoped-VMEM cap: ~48 MiB on v7x (64 MiB VMEM), ~96-100 MiB
    on v5e/v6e (128 MiB VMEM)."""
    try:
        cap = int(pltpu.get_tpu_info().vmem_capacity_bytes)
    except Exception:
        cap = 64 << 20  # assume the smallest (v7x per-core) if query fails
    return min(100 << 20, (cap * 3) // 4)


def autoencoder_forward(x, W_enc, W_dec, b_enc, b_dec, l1_coeff=0.0003,
                        *, tb=512, th=512,
                        weights_dtype=jnp.bfloat16,
                        acts_dtype=jnp.float32):
    B, d_in = x.shape
    d_hidden = W_enc.shape[1]
    hp = jax.lax.Precision.HIGHEST

    wbytes = jnp.dtype(weights_dtype).itemsize
    abytes = jnp.dtype(acts_dtype).itemsize

    # --- hidden tile: must divide d_hidden and be lane-aligned (or full dim) ---
    th = min(int(th), d_hidden)
    if d_hidden % th != 0 or (th % 128 != 0 and th != d_hidden):
        th = d_hidden

    # --- batch tile: multiple of 8 sublanes, and keep >= 2 tiles on the
    #     "parallel" axis so both v7x TensorCores get work ---
    tb = max(8, min(int(tb), _round_up(B, 8)))
    tb = _round_up(tb, 8)
    if B > 8:
        tb = min(tb, _round_up((B + 1) // 2, 8))

    # --- shrink tiles if the double-buffered slab estimate won't fit VMEM ---
    vmem_limit = _vmem_limit_bytes()

    def _vmem_estimate(tb_, th_):
        return (2 * tb_ * d_in * 4            # x input (double-buffered)
                + 2 * d_in * th_ * wbytes     # W_enc column slab
                + 2 * th_ * d_in * wbytes     # W_dec row slab
                + 2 * th_ * 4 + 2 * d_in * 4  # biases
                + 2 * tb_ * d_in * 4          # x_rec output / accumulator
                + 2 * tb_ * th_ * abytes      # acts output
                + 2 * tb_ * 128 * 4           # packed per-row losses
                + tb_ * 4)                    # l1 accumulator scratch

    budget = int(vmem_limit * 0.8)
    while (_vmem_estimate(tb, th) > budget and th % 2 == 0 and th // 2 >= 128
           and d_hidden % (th // 2) == 0):
        th //= 2
    while _vmem_estimate(tb, th) > budget and tb % 16 == 0 and tb // 2 >= 8:
        tb //= 2

    Bp = _round_up(B, tb)
    nbt = Bp // tb
    nht = d_hidden // th

    # Zero-pad the batch if needed (padded rows are sliced off afterwards).
    x_p = x if Bp == B else jnp.zeros((Bp, d_in), x.dtype).at[:B].set(x)

    # Fold the decoder bias into the encoder bias (exact in real arithmetic):
    #   relu((x - b_dec) @ W_enc + b_enc) == relu(x @ W_enc + b_enc_eff)
    b_enc_eff = b_enc - jnp.matmul(b_dec[None, :], W_enc, precision=hp)[0]

    W_enc_s = W_enc.astype(weights_dtype)
    W_dec_s = W_dec.astype(weights_dtype)

    out_shape = (
        jax.ShapeDtypeStruct((Bp, d_in), jnp.float32),      # x_reconstruct
        jax.ShapeDtypeStruct((Bp, d_hidden), acts_dtype),   # acts
        jax.ShapeDtypeStruct((Bp, 128), jnp.float32),       # packed l2 / l1 rows
    )

    grid_spec = pltpu.PrefetchScalarGridSpec(
        num_scalar_prefetch=0,
        grid=(nbt, nht),
        in_specs=[
            pl.BlockSpec((tb, d_in), lambda i, h: (i, 0)),   # x (resident over h)
            pl.BlockSpec((d_in, th), lambda i, h: (0, h)),   # W_enc column slab
            pl.BlockSpec((th, d_in), lambda i, h: (h, 0)),   # W_dec row slab
            pl.BlockSpec((1, th), lambda i, h: (0, h)),      # b_enc_eff slab
            pl.BlockSpec((1, d_in), lambda i, h: (0, 0)),    # b_dec
        ],
        out_specs=(
            pl.BlockSpec((tb, d_in), lambda i, h: (i, 0)),   # x_rec (accumulator)
            pl.BlockSpec((tb, th), lambda i, h: (i, h)),     # acts
            pl.BlockSpec((tb, 128), lambda i, h: (i, 0)),    # packed loss rows
        ),
        scratch_shapes=[
            pltpu.VMEM((tb, 1), jnp.float32),                # per-row l1 partial
        ],
    )

    flops = 4 * Bp * d_in * d_hidden          # two matmuls, 2 flops/MAC
    bytes_accessed = (4 * Bp * d_in                          # x read
                      + nbt * 2 * d_in * d_hidden * wbytes   # weights re-streamed
                      + 4 * Bp * d_in                        # x_rec write
                      + abytes * Bp * d_hidden               # acts write
                      + 4 * Bp * 128                         # loss rows write
                      + 4 * (d_in + d_hidden))               # biases

    x_rec_p, acts_p, loss_rows = pl.pallas_call(
        _sae_kernel,
        out_shape=out_shape,
        grid_spec=grid_spec,
        compiler_params=pltpu.CompilerParams(
            dimension_semantics=("parallel", "arbitrary"),
            vmem_limit_bytes=vmem_limit,
        ),
        cost_estimate=pl.CostEstimate(
            flops=flops, transcendentals=0, bytes_accessed=bytes_accessed),
    )(x_p, W_enc_s, W_dec_s, b_enc_eff.reshape(1, -1), b_dec.reshape(1, -1))

    x_rec = x_rec_p[:B]
    acts = acts_p[:B]
    l2_loss = jnp.mean(loss_rows[:B, 0])
    l1_loss = jnp.float32(l1_coeff) * jnp.sum(loss_rows[:B, 1])
    loss = l2_loss + l1_loss
    return loss, x_rec, acts, l2_loss, l1_loss


def init_params(key, d_in, d_hidden):
    """Kaiming-uniform-style init mirroring the torch __init__ (biases zero)."""
    k_enc, k_dec = jax.random.split(key)
    bound_enc = jnp.sqrt(6.0 / d_in)       # fan_in = d_in
    bound_dec = jnp.sqrt(6.0 / d_hidden)   # fan_in = d_hidden
    W_enc = jax.random.uniform(k_enc, (d_in, d_hidden), jnp.float32,
                               -bound_enc, bound_enc)
    W_dec = jax.random.uniform(k_dec, (d_hidden, d_in), jnp.float32,
                               -bound_dec, bound_dec)
    W_dec = W_dec / jnp.linalg.norm(W_dec, axis=-1, keepdims=True)
    b_enc = jnp.zeros((d_hidden,), jnp.float32)
    b_dec = jnp.zeros((d_in,), jnp.float32)
    return W_enc, W_dec, b_enc, b_dec


def _reference_f32(x, W_enc, W_dec, b_enc, b_dec, l1_coeff):
    """Pure-JAX f32 reference (torch semantics, highest-precision matmuls)."""
    hp = jax.lax.Precision.HIGHEST
    x_cent = x - b_dec
    acts = jnp.maximum(jnp.matmul(x_cent, W_enc, precision=hp) + b_enc, 0.0)
    x_rec = jnp.matmul(acts, W_dec, precision=hp) + b_dec
    l2 = jnp.mean(jnp.sum((x_rec - x) ** 2, axis=-1))
    l1 = l1_coeff * jnp.sum(jnp.abs(acts))
    return l2 + l1, x_rec, acts, l2, l1


def _reference_bf16(x, W_enc, W_dec, b_enc, b_dec, l1_coeff):
    """Reference that mirrors the kernel's bf16-weight-streaming math
    (folded decoder bias, bf16 MXU operands, f32 accumulation)."""
    hp = jax.lax.Precision.HIGHEST
    wd = jnp.bfloat16
    b_enc_eff = b_enc - jnp.matmul(b_dec[None, :], W_enc, precision=hp)[0]
    acts = jnp.maximum(
        jnp.matmul(x.astype(wd), W_enc.astype(wd),
                   preferred_element_type=jnp.float32) + b_enc_eff, 0.0)
    x_rec = jnp.matmul(acts.astype(wd), W_dec.astype(wd),
                       preferred_element_type=jnp.float32) + b_dec
    l2 = jnp.mean(jnp.sum((x_rec - x) ** 2, axis=-1))
    l1 = l1_coeff * jnp.sum(jnp.abs(acts))
    return l2 + l1, x_rec, acts, l2, l1


if __name__ == "__main__":
    key = jax.random.PRNGKey(0)
    # Small but MXU-meaningful demo: 2 batch tiles x 2 hidden tiles.
    B, d_in, dict_mult = 256, 128, 4
    d_hidden = d_in * dict_mult
    l1_coeff = 0.0003

    k_x, k_p, k_be, k_bd = jax.random.split(key, 4)
    x = jax.random.normal(k_x, (B, d_in), jnp.float32)
    W_enc, W_dec, b_enc, b_dec = init_params(k_p, d_in, d_hidden)
    # Torch init has zero biases; perturb them so the bias-folding path is
    # actually exercised by the correctness checks.
    b_enc = b_enc + 0.01 * jax.random.normal(k_be, (d_hidden,), jnp.float32)
    b_dec = b_dec + 0.05 * jax.random.normal(k_bd, (d_in,), jnp.float32)

    # --- Path 1: pure-f32 weight streaming, checked against torch-f32 math ---
    out_f32 = autoencoder_forward(x, W_enc, W_dec, b_enc, b_dec, l1_coeff,
                                  th=256, weights_dtype=jnp.float32)
    jax.block_until_ready(out_f32)
    ref_f32 = _reference_f32(x, W_enc, W_dec, b_enc, b_dec, l1_coeff)
    loss, x_rec, acts, l2, l1 = out_f32
    loss_r, x_rec_r, acts_r, l2_r, l1_r = ref_f32
    assert jnp.allclose(acts, acts_r, atol=5e-3, rtol=5e-3)
    assert jnp.allclose(x_rec, x_rec_r, atol=5e-3, rtol=5e-3)
    assert jnp.allclose(l2, l2_r, rtol=5e-3, atol=5e-3)
    assert jnp.allclose(l1, l1_r, rtol=5e-3, atol=5e-3)
    assert jnp.allclose(loss, loss_r, rtol=5e-3, atol=5e-3)

    # --- Path 2: bf16 weight streaming (default / fast path), checked against
    #     a reference implementing identical bf16-operand math ---
    out_bf16 = autoencoder_forward(x, W_enc, W_dec, b_enc, b_dec, l1_coeff,
                                   th=256, weights_dtype=jnp.bfloat16)
    jax.block_until_ready(out_bf16)
    ref_bf16 = _reference_bf16(x, W_enc, W_dec, b_enc, b_dec, l1_coeff)
    loss_b, x_rec_b, acts_b, l2_b, l1_b = out_bf16
    loss_br, x_rec_br, acts_br, l2_br, l1_br = ref_bf16
    assert jnp.allclose(acts_b, acts_br, atol=1e-2, rtol=1e-2)
    assert jnp.allclose(x_rec_b, x_rec_br, atol=1e-2, rtol=1e-2)
    assert jnp.allclose(l2_b, l2_br, rtol=1e-2, atol=1e-2)
    assert jnp.allclose(l1_b, l1_br, rtol=1e-2, atol=1e-2)
    assert jnp.allclose(loss_b, loss_br, rtol=1e-2, atol=1e-2)

    print("KERNEL_OK")
</pallas_src>

<mosaic_0001>
module attributes {stable_mosaic.version = 11 : i64} {
  func.func @_sae_kernel(%arg0: i32, %arg1: i32, %arg2: memref<128x128xf32, #tpu.memory_space<vmem>>, %arg3: memref<128x256xf32, #tpu.memory_space<vmem>>, %arg4: memref<256x128xf32, #tpu.memory_space<vmem>>, %arg5: memref<1x256xf32, #tpu.memory_space<vmem>>, %arg6: memref<1x128xf32, #tpu.memory_space<vmem>>, %arg7: memref<128x128xf32, #tpu.memory_space<vmem>>, %arg8: memref<128x256xf32, #tpu.memory_space<vmem>>, %arg9: memref<128x128xf32, #tpu.memory_space<vmem>>, %arg10: memref<128x1xf32, #tpu.memory_space<vmem>>) attributes {dimension_semantics = [#tpu.dimension_semantics<parallel>, #tpu.dimension_semantics<arbitrary>], iteration_bounds = array<i64: 2, 2>, scalar_prefetch = 0 : i64, scratch_operands = 1 : i64, tpu.core_type = #tpu.core_type<tc>, window_params = [{transform_indices = @transform_0, window_bounds = array<i64: 128, 128>}, {transform_indices = @transform_1, window_bounds = array<i64: 128, 256>}, {transform_indices = @transform_2, window_bounds = array<i64: 256, 128>}, {transform_indices = @transform_3, window_bounds = array<i64: 1, 256>}, {pipeline_mode = #tpu.pipeline_mode<synchronous>, transform_indices = @transform_4, window_bounds = array<i64: 1, 128>}, {transform_indices = @transform_5, window_bounds = array<i64: 128, 128>}, {transform_indices = @transform_6, window_bounds = array<i64: 128, 256>}, {transform_indices = @transform_7, window_bounds = array<i64: 128, 128>}]} {
    %c0_i32 = arith.constant 0 : i32
    %0 = arith.cmpi eq, %arg1, %c0_i32 : i32
    %1 = arith.extui %0 : i1 to i32
    %c0_i32_0 = arith.constant 0 : i32
    %2 = arith.cmpi ne, %1, %c0_i32_0 : i32
    scf.if %2 {
      %cst_22 = arith.constant 0.000000e+00 : f32
      %25 = vector.broadcast %cst_22 : f32 to vector<128x128xf32>
      %c0_23 = arith.constant 0 : index
      %c0_24 = arith.constant 0 : index
      %26 = vector.load %arg7[%c0_23, %c0_24] : memref<128x128xf32, #tpu.memory_space<vmem>>, vector<128x128xf32>
      tpu.vector_store %arg7[%c0_23, %c0_24], %25 {strides = array<i32>} : memref<128x128xf32, #tpu.memory_space<vmem>>, vector<128x128xf32>,
      %cst_25 = arith.constant 0.000000e+00 : f32
      %27 = vector.broadcast %cst_25 : f32 to vector<128x1xf32>
      %c0_26 = arith.constant 0 : index
      %c0_27 = arith.constant 0 : index
      %28 = vector.load %arg10[%c0_26, %c0_27] : memref<128x1xf32, #tpu.memory_space<vmem>>, vector<128x1xf32>
      tpu.vector_store %arg10[%c0_26, %c0_27], %27 {strides = array<i32>} : memref<128x1xf32, #tpu.memory_space<vmem>>, vector<128x1xf32>,
    } else {
    }
    %c0 = arith.constant 0 : index
    %c0_1 = arith.constant 0 : index
    %3 = vector.load %arg2[%c0, %c0_1] : memref<128x128xf32, #tpu.memory_space<vmem>>, vector<128x128xf32>
    %c0_2 = arith.constant 0 : index
    %c0_3 = arith.constant 0 : index
    %4 = vector.load %arg3[%c0_2, %c0_3] : memref<128x256xf32, #tpu.memory_space<vmem>>, vector<128x256xf32>
    %cst = arith.constant dense<0.000000e+00> : vector<128x256xf32>
    %5 = tpu.matmul %3, %4, %cst {dimension_numbers = #tpu.dot_dimension_numbers<[1], [0], [0], [1], [0, 0, 1, 1], [], []>} : vector<128x128xf32>, vector<128x256xf32>, vector<128x256xf32> -> vector<128x256xf32>
    %c0_4 = arith.constant 0 : index
    %c0_5 = arith.constant 0 : index
    %6 = vector.load %arg5[%c0_4, %c0_5] : memref<1x256xf32, #tpu.memory_space<vmem>>, vector<1x256xf32>
    %7 = vector.broadcast %6 : vector<1x256xf32> to vector<128x256xf32>
    %8 = arith.addf %5, %7 : vector<128x256xf32>
    %cst_6 = arith.constant 0.000000e+00 : f32
    %9 = vector.broadcast %cst_6 : f32 to vector<128x256xf32>
    %10 = arith.maximumf %8, %9 : vector<128x256xf32>
    %c0_7 = arith.constant 0 : index
    %c0_8 = arith.constant 0 : index
    %11 = vector.load %arg8[%c0_7, %c0_8] : memref<128x256xf32, #tpu.memory_space<vmem>>, vector<128x256xf32>
    tpu.vector_store %arg8[%c0_7, %c0_8], %10 {strides = array<i32>} : memref<128x256xf32, #tpu.memory_space<vmem>>, vector<128x256xf32>,
    %c0_9 = arith.constant 0 : index
    %c0_10 = arith.constant 0 : index
    %12 = vector.load %arg10[%c0_9, %c0_10] : memref<128x1xf32, #tpu.memory_space<vmem>>, vector<128x1xf32>
    %cst_11 = arith.constant dense<0.000000e+00> : vector<128xf32>
    %13 = vector.multi_reduction <add>, %10, %cst_11 [1] : vector<128x256xf32> to vector<128xf32>
    %14 = vector.shape_cast %13 : vector<128xf32> to vector<128x1xf32>
    %15 = arith.addf %12, %14 : vector<128x1xf32>
    %c0_12 = arith.constant 0 : index
    %c0_13 = arith.constant 0 : index
    %16 = vector.load %arg10[%c0_12, %c0_13] : memref<128x1xf32, #tpu.memory_space<vmem>>, vector<128x1xf32>
    tpu.vector_store %arg10[%c0_12, %c0_13], %15 {strides = array<i32>} : memref<128x1xf32, #tpu.memory_space<vmem>>, vector<128x1xf32>,
    %c0_14 = arith.constant 0 : index
    %c0_15 = arith.constant 0 : index
    %17 = vector.load %arg7[%c0_14, %c0_15] : memref<128x128xf32, #tpu.memory_space<vmem>>, vector<128x128xf32>
    %c0_16 = arith.constant 0 : index
    %c0_17 = arith.constant 0 : index
    %18 = vector.load %arg4[%c0_16, %c0_17] : memref<256x128xf32, #tpu.memory_space<vmem>>, vector<256x128xf32>
    %cst_18 = arith.constant dense<0.000000e+00> : vector<128x128xf32>
    %19 = tpu.matmul %10, %18, %cst_18 {dimension_numbers = #tpu.dot_dimension_numbers<[1], [0], [0], [1], [0, 0, 1, 1], [], []>} : vector<128x256xf32>, vector<256x128xf32>, vector<128x128xf32> -> vector<128x128xf32>
    %20 = arith.addf %17, %19 : vector<128x128xf32>
    %c0_19 = arith.constant 0 : index
    %c0_20 = arith.constant 0 : index
    %21 = vector.load %arg7[%c0_19, %c0_20] : memref<128x128xf32, #tpu.memory_space<vmem>>, vector<128x128xf32>
    tpu.vector_store %arg7[%c0_19, %c0_20], %20 {strides = array<i32>} : memref<128x128xf32, #tpu.memory_space<vmem>>, vector<128x128xf32>,
    %c1_i32 = arith.constant 1 : i32
    %22 = arith.cmpi eq, %arg1, %c1_i32 : i32
    %23 = arith.extui %22 : i1 to i32
    %c0_i32_21 = arith.constant 0 : i32
    %24 = arith.cmpi ne, %23, %c0_i32_21 : i32
    scf.if %24 {
      %c0_22 = arith.constant 0 : index
      %c0_23 = arith.constant 0 : index
      %25 = vector.load %arg7[%c0_22, %c0_23] : memref<128x128xf32, #tpu.memory_space<vmem>>, vector<128x128xf32>
      %c0_24 = arith.constant 0 : index
      %c0_25 = arith.constant 0 : index
      %26 = vector.load %arg6[%c0_24, %c0_25] : memref<1x128xf32, #tpu.memory_space<vmem>>, vector<1x128xf32>
      %27 = vector.broadcast %26 : vector<1x128xf32> to vector<128x128xf32>
      %28 = arith.addf %25, %27 : vector<128x128xf32>
      %c0_26 = arith.constant 0 : index
      %c0_27 = arith.constant 0 : index
      %29 = vector.load %arg7[%c0_26, %c0_27] : memref<128x128xf32, #tpu.memory_space<vmem>>, vector<128x128xf32>
      tpu.vector_store %arg7[%c0_26, %c0_27], %28 {strides = array<i32>} : memref<128x128xf32, #tpu.memory_space<vmem>>, vector<128x128xf32>,
      %c0_28 = arith.constant 0 : index
      %c0_29 = arith.constant 0 : index
      %30 = vector.load %arg2[%c0_28, %c0_29] : memref<128x128xf32, #tpu.memory_space<vmem>>, vector<128x128xf32>
      %31 = arith.subf %28, %30 : vector<128x128xf32>
      %32 = arith.mulf %31, %31 : vector<128x128xf32>
      %cst_30 = arith.constant dense<0.000000e+00> : vector<128xf32>
      %33 = vector.multi_reduction <add>, %32, %cst_30 [1] : vector<128x128xf32> to vector<128xf32>
      %34 = vector.shape_cast %33 : vector<128xf32> to vector<128x1xf32>
      %35 = tpu.iota {dimensions = array<i32: 1>} : vector<128x128xi32>
      %c0_i32_31 = arith.constant 0 : i32
      %36 = vector.broadcast %c0_i32_31 : i32 to vector<128x128xi32>
      %37 = arith.cmpi eq, %35, %36 : vector<128x128xi32>
      %c1_i32_32 = arith.constant 1 : i32
      %38 = vector.broadcast %c1_i32_32 : i32 to vector<128x128xi32>
      %39 = arith.cmpi eq, %35, %38 : vector<128x128xi32>
      %c0_33 = arith.constant 0 : index
      %c0_34 = arith.constant 0 : index
      %40 = vector.load %arg10[%c0_33, %c0_34] : memref<128x1xf32, #tpu.memory_space<vmem>>, vector<128x1xf32>
      %cst_35 = arith.constant 0.000000e+00 : f32
      %41 = vector.shape_cast %40 : vector<128x1xf32> to vector<128x1xf32>
      %42 = vector.broadcast %41 : vector<128x1xf32> to vector<128x128xf32>
      %43 = vector.broadcast %cst_35 : f32 to vector<128x128xf32>
      %44 = arith.select %39, %42, %43 : vector<128x128xi1>, vector<128x128xf32>
      %45 = vector.shape_cast %34 : vector<128x1xf32> to vector<128x1xf32>
      %46 = vector.broadcast %45 : vector<128x1xf32> to vector<128x128xf32>
      %47 = arith.select %37, %46, %44 : vector<128x128xi1>, vector<128x128xf32>
      %c0_36 = arith.constant 0 : index
      %c0_37 = arith.constant 0 : index
      %48 = vector.load %arg9[%c0_36, %c0_37] : memref<128x128xf32, #tpu.memory_space<vmem>>, vector<128x128xf32>
      tpu.vector_store %arg9[%c0_36, %c0_37], %47 {strides = array<i32>} : memref<128x128xf32, #tpu.memory_space<vmem>>, vector<128x128xf32>,
    } else {
    }
    return
  }
  func.func @transform_0(%arg0: i32, %arg1: i32) -> (i32, i32) {
    %c0_i32 = arith.constant 0 : i32
    %c0_i32_0 = arith.constant 0 : i32
    return %arg0, %c0_i32 : i32, i32
  }
  func.func @transform_1(%arg0: i32, %arg1: i32) -> (i32, i32) {
    %c0_i32 = arith.constant 0 : i32
    %c0_i32_0 = arith.constant 0 : i32
    return %c0_i32, %arg1 : i32, i32
  }
  func.func @transform_2(%arg0: i32, %arg1: i32) -> (i32, i32) {
    %c0_i32 = arith.constant 0 : i32
    %c0_i32_0 = arith.constant 0 : i32
    return %arg1, %c0_i32 : i32, i32
  }
  func.func @transform_3(%arg0: i32, %arg1: i32) -> (i32, i32) {
    %c0_i32 = arith.constant 0 : i32
    %c0_i32_0 = arith.constant 0 : i32
    return %c0_i32, %arg1 : i32, i32
  }
  func.func @transform_4(%arg0: i32, %arg1: i32) -> (i32, i32) {
    %c0_i32 = arith.constant 0 : i32
    %c0_i32_0 = arith.constant 0 : i32
    %c0_i32_1 = arith.constant 0 : i32
    return %c0_i32, %c0_i32_0 : i32, i32
  }
  func.func @transform_5(%arg0: i32, %arg1: i32) -> (i32, i32) {
    %c0_i32 = arith.constant 0 : i32
    %c0_i32_0 = arith.constant 0 : i32
    return %arg0, %c0_i32 : i32, i32
  }
  func.func @transform_6(%arg0: i32, %arg1: i32) -> (i32, i32) {
    %c0_i32 = arith.constant 0 : i32
    return %arg0, %arg1 : i32, i32
  }
  func.func @transform_7(%arg0: i32, %arg1: i32) -> (i32, i32) {
    %c0_i32 = arith.constant 0 : i32
    %c0_i32_0 = arith.constant 0 : i32
    return %arg0, %c0_i32 : i32, i32
  }
}

</mosaic_0001>

<bundles_post_ra>
// kernel: tpu_custom_call.1
= control target key start
LH: loop header
LB: loop body
LE: loop exit
PB: predicated region body
PF: predicated region fallthrough
CT: control target
= control target key end

     0   :  { %s2974_s0 = inlined_call_operand.hbm [shape: f32[256,128], index: 0, kind: input, shape index: {}]   ;;  %s2975_s1 = inlined_call_operand.hbm [shape: f32[128,512], index: 1, kind: input, shape index: {}]   ;;  %s2976_s2 = inlined_call_operand.hbm [shape: f32[512,128], index: 2, kind: input, shape index: {}]   ;;  %s2977_s3 = inlined_call_operand.hbm [shape: f32[1,512], index: 3, kind: input, shape index: {}]   ;;  %s2978_s4 = inlined_call_operand.vmem [shape: f32[1,128], index: 4, kind: input, shape index: {}]   ;;  %s2979_s5 = inlined_call_operand.hbm [shape: f32[256,128], index: 5, kind: output, shape index: {0}]   ;;  %s2980_s6 = inlined_call_operand.hbm [shape: f32[256,512], index: 6, kind: output, shape index: {1}]   ;;  %s2981_s7 = inlined_call_operand.hbm [shape: f32[256,128], index: 7, kind: output, shape index: {2}]  }
   0x1   :  { %3001 = sst [smem:[#allocation37_spill]] %s2974_s0 }
   0x2   :  { %3002 = sst [smem:[#allocation38_spill]] %s2975_s1 }
   0x3   :  { %3003 = sst [smem:[#allocation39_spill]] %s2976_s2 }
   0x4   :  { %3004 = sst [smem:[#allocation40_spill]] %s2978_s4 }
   0x5   :  { %3005 = sst [smem:[#allocation41_spill]] %s2979_s5 }
   0x6   :  { %3006 = sst [smem:[#allocation42_spill]] %s2980_s6 }
   0x7   :  { %3007 = sst [smem:[#allocation43_spill]] %s2981_s7 }
   0x8   :  { %13 = vsyncpa [#allocation4], 0 }
   0x9   :  { %15 = vsyncpa [#allocation4 + $0x1], 0 }
   0xa   :  { %16 = vsyncpa [#allocation7], 0 }
   0xb   :  { %18 = vsyncpa [#allocation7 + $0x1], 0 }
   0xc   :  { %19 = vsyncpa [#allocation10], 0 }
   0xd   :  { %21 = vsyncpa [#allocation10 + $0x1], 0 }
   0xe   :  { %22 = vsyncpa [#allocation5], 0 }
   0xf   :  { %24 = vsyncpa [#allocation5 + $0x1], 0 }
  0x10   :  { %25 = vsyncpa [#allocation13], 0 }
  0x11   :  { %27 = vsyncpa [#allocation13 + $0x1], 0  ;;  %s2217_s24 = smov 0   ;;  %s2219_s25 = smov 0  }
  0x12   :  { %s2221_s26 = smov 0   ;;  %s2223_s27 = smov 0  }
  0x13   :  { %s2225_s28 = smov 0   ;;  %s2227_s29 = smov 0  }
  0x14   :  { %s2229_s30 = smov 0   ;;  %s2231_s8 = smov 0  }
  0x15   :  { %s2233_s9 = smov 0   ;;  %s2235_s10 = smov 0  }
  0x16   :  { %s2237_s11 = smov 0   ;;  %s2239_s12 = smov 0  }
  0x17   :  { %s2241_s13 = smov 0   ;;  %s2243_s14 = smov 0  }
  0x18 LB: > { %3008 = sst [smem:[#allocation21_spill]] %s2119_s26  ;;  %p60_p0 = scmp.eq.s32.totalorder %s2163_s14, 0  ;;  %s2163_s14 = sphi %s2243_s14, %s33_s14   ;;  %s2159_s13 = sphi %s2241_s13, %s3077_s13   ;;  %s2155_s12 = sphi %s2239_s12, %s3076_s12   ;;  %s2151_s11 = sphi %s2237_s11, %s3065_s11   ;;  %s2147_s10 = sphi %s2235_s10, %s3075_s10   ;;  %s2143_s9 = sphi %s2233_s9, %s3064_s9   ;;  %s2139_s8 = sphi %s2231_s8, %s3074_s8   ;;  %s2135_s30 = sphi %s2229_s30, %s3073_s30   ;;  %s2131_s29 = sphi %s2227_s29, %s3062_s29   ;;  %s2127_s28 = sphi %s2225_s28, %s3072_s28   ;;  %s2123_s27 = sphi %s2223_s27, %s3071_s27   ;;  %s2119_s26 = sphi %s2221_s26, %s3070_s26   ;;  %s2115_s25 = sphi %s2219_s25, %s3069_s25   ;;  %s2111_s24 = sphi %s2217_s24, %s3068_s24  }
  0x19   : > { %3009 = sst [smem:[#allocation22_spill]] %s2131_s29  ;;  %p85_p1 = scmp.ne.s32.totalorder %s2131_s29, %s2127_s28 }
  0x1a   : > { %3010 = sst [smem:[#allocation23_spill]] %s2135_s30  ;;  %p91_p2 = scmp.ne.s32.totalorder %s2127_s28, %s2123_s27 }
  0x1b   : > { %3011 = sst [smem:[#allocation24_spill]] %s2143_s9  ;;  %p2988_p3 = scmp.lt.s32.totalorder %s2163_s14, 4 }
  0x1c   : > { %3012 = sst [smem:[#allocation25_spill]] %s2147_s10  ;;  %p87_p4 = por %p85_p1, %p60_p0 }
  0x1d   : > { %3013 = sst [smem:[#allocation26_spill]] %s2151_s11  ;;  %s293_s16 = sand.u32 1, %s2163_s14  }
  0x1e   : > { %3014 = sst [smem:[#allocation27_spill]] %s2159_s13  ;;  %s2298_s17 = sand.u32 1, %s2131_s29  }
  0x1f   : > { %s2984_s18 = sshll.u32 %s2298_s17, 8  ;;  %s1653_s19 = sshll.u32 %s2155_s12, 4 }
  0x20   : > { %s3015_s1 = sld [smem:[#allocation38_spill]]  ;;  %s297_s15 = scalar_lea.vmem [#allocation6], %s2984_s18 }
  0x21   : > { %s305_s7 = sshll.u32 %s297_s15, 4  ;;  %p2309_p5 = pnand %p2988_p3, %p87_p4  ;;  %s306_s7 = int_to_ptr.vmem [resolvable:$true] %s305_s7 }
  0x22   : > { %p1629_p6 = scmp.ge.s32.totalorder %s2163_s14, 1  ;;  %s2165_s20 = smov 512  }
  0x23   : > { %s2166_s15 = smov 256   ;;  %s2167_s21 = smov 16  }
  0x24   : > { %p354_p7 = scmp.lt.s32.totalorder %s2163_s14, 5  ;;  %s45_s6 = sadd.s32 1, %s2159_s13 }
  0x25   : > { %p59_p10 = scmp.ne.s32.totalorder %s2143_s9, %s2139_s8  ;;  %p65_p11 = scmp.ne.s32.totalorder %s2139_s8, %s2135_s30 }
  0x26   : > { %s302_s22 = scalar_lea.hbm %s3015_s1, %s1653_s19  ;;  %s2314_s19 = scalar_lea.sflag [#allocation7], %s293_s16 }
  0x27   : > { %s303_s23 = sshll.u32 %s302_s22, 4  ;;  %p2320_p8 = pnand %p1629_p6, %p354_p7  ;;  %s304_s23 = int_to_ptr.hbm [resolvable:$true] %s303_s23 }
  0x28   : > { %1678 = dma.hbm_to_vmem [thread:$0]  (!%p2309_p5), %s304_s23, 4096, %s306_s7, %s2314_s19, %s2165_s20, %s2166_s15, %s2167_s21  }
  0x29   : > { %s3017_s22 = scalar_select %p2320_p8, 1, 0 }
  0x2a   : > { %s2325_s16 = sadd.s32 4294967295, %s2163_s14   ;;  %s42_s1 = sadd.s32 1, %s2155_s12 }
  0x2b   : > { %3018 = sst [smem:[#allocation28_spill]] %s3017_s22  ;;  %p43_p9 = scmp.ge.s32.totalorder %s42_s1, 2 }
  0x2c   : > { %s52_s7 = sadd.s32 1, %s2143_s9  ;;  %p2343_p12 = por %p60_p0, %p59_p10 }
  0x2d   : > { %s3079_s1 = smov (%p43_p9, %s42_s1), 0  ;;  %s3081_s6 = smov (!%p43_p9, %s45_s6), %s2159_s13 }
  0x2e   : > { %3019 = sst [smem:[#allocation29_spill]] %s3079_s1  ;;  %p66_p13 = scmp.eq.s32.totalorder %s2325_s16, 0 }
  0x2f   : > { %p47_p1 = scmp.ge.s32.totalorder %s3081_s6, 2  ;;  %s75_s20 = ssub.s32 %s2155_s12, %s3079_s1 }
  0x30   : > { %p2353_p4 = por %p66_p13, %p65_p11  ;;  %p76_p6 = scmp.eq.s32.totalorder %s75_s20, 0 }
  0x31   : > { %s3083_s6 = smov (%p47_p1, %s3081_s6), 0  ;;  %s3024_s21 = sadd.s32 1, %s2131_s29 }
  0x32   : > { %s3021_s15 = scalar_select %p2353_p4, 1, 0 }
  0x33   : > { %3023 = sst [smem:[#allocation31_spill]] %s3083_s6  ;;  %s49_s11 = ssub.s32 %s2159_s13, %s3083_s6 }
  0x34   : > { %3022 = sst [smem:[#allocation30_spill]] %s3021_s15  ;;  %p2369_p0 = por %p91_p2, %p66_p13 }
  0x35   : > { %s2362_s18 = scalar_select %p76_p6, %s2131_s29, %s3024_s21  }
  0x36   : > { %s3026_s1 = scalar_select %p2369_p0, 1, 0 }
  0x37   : > { %3025 = sst [smem:[#allocation32_spill]] %s2362_s18  ;;  %p50_p7 = scmp.eq.s32.totalorder %s49_s11, 0 }
  0x38   : > { %p188_p9 = scmp.eq.s32.totalorder %s2325_s16, 3  ;;  %s3027_s4 = sadd.s32 4294967294, %s2163_s14  }
  0x39   : > { %p194_p3 = scmp.eq.s32.totalorder %s3027_s4, 3  ;;  %s202_s10 = sor.u32 %s75_s20, %s49_s11 }
  0x3a   : > { %s2377_s15 = scalar_select %p50_p7, %s2143_s9, %s52_s7  }
  0x3b   : > { %p2382_p1 = por %p188_p9, %p59_p10  ;;  %p2389_p6 = por %p194_p3, %p65_p11 }
  0x3c   : > { %3028 = sst [smem:[#allocation33_spill]] %s2377_s15  ;;  %p203_p2 = scmp.eq.s32.totalorder %s202_s10, 0 }
  0x3d   : > { %s3030_s27 = scalar_select %p2389_p6, 1, 0 }
  0x3e   : > { %s205_s21 = sadd.s32 1, %s2119_s26  ;;  %p215_p13 = scmp.ne.s32.totalorder %s2119_s26, %s2115_s25 }
  0x3f   : > { %3031 = sst [smem:[#allocation34_spill]] %s3030_s27  ;;  %p221_p0 = scmp.ne.s32.totalorder %s2115_s25, %s2111_s24 }
  0x40   : > { %s2399_s4 = scalar_select %p203_p2, %s2119_s26, %s205_s21  }
  0x41   : > { %p2401_p7 = por %p215_p13, %p188_p9  ;;  %p2405_p10 = por %p221_p0, %p194_p3 }
  0x42   : > { %3032 = sst [smem:[#allocation35_spill]] %s2399_s4  ;;  %s271_s20 = sand.u32 1, %s2143_s9  }
  0x43   : > { %s3034_s7 = scalar_select %p2405_p10, 1, 0 }
  0x44   : > { %s1652_s6 = sshll.u32 %s2159_s13, 7  ;;  %s1618_s10 = sshll.u32 %s271_s20, 7 }
  0x45   : > { %3035 = sst [smem:[#allocation36_spill]] %s3034_s7  ;;  %s275_s24 = scalar_lea.vmem [#allocation3], %s1618_s10 }
  0x46   : > { %s3036_s0 = sld [smem:[#allocation37_spill]]  ;;  %s283_s21 = sshll.u32 %s275_s24, 4  ;;  %s284_s21 = int_to_ptr.vmem [resolvable:$true] %s283_s21 }
  0x47   : > { %p3037_p3 = scmp.lt.s32.totalorder %s2163_s14, 4  ;;  %s1654_s9 = sshll.u32 %s2155_s12, 8 }
  0x48   : > { %s272_s4 = scalar_lea.sflag [#allocation4], %s271_s20  ;;  %s2168_s13 = smov 128  }
  0x49   : > { %p1673_p11 = pnand %p3037_p3, %p2343_p12  ;;  %s2169_s26 = smov 8  }
  0x4a   : > { %s3038_s2 = sld [smem:[#allocation39_spill]]  ;;  %s1627_s23 = sshll.u32 %s2298_s17, 1 }
  0x4c   : > { %s280_s29 = scalar_lea.hbm %s3036_s0, %s1652_s6  ;;  %s1628_s0 = sshll.u32 %s2155_s12, 1 }
  0x4d   : > { %s281_s27 = sshll.u32 %s280_s29, 4  ;;  %s3039_s29 = sshll.u32 %s2298_s17, 8  ;;  %s282_s27 = int_to_ptr.hbm [resolvable:$true] %s281_s27 }
  0x4e   : > { %1675 = dma.hbm_to_vmem [thread:$0]  (!%p1673_p11), %s282_s27, 2048, %s284_s21, %s272_s4, %s2168_s13, %s2168_s13, %s2169_s26  }
  0x4f   : > { %s319_s15 = scalar_lea.vmem [#allocation8], %s3039_s29  ;;  %s345_s27 = scalar_lea.hbm %s2977_s3, %s1628_s0 }
  0x50   : > { %s324_s6 = scalar_lea.hbm %s3038_s2, %s1654_s9  ;;  %s327_s10 = sshll.u32 %s319_s15, 4  ;;  %s328_s10 = int_to_ptr.vmem [resolvable:$true] %s327_s10 }
  0x51   : > { %s325_s24 = sshll.u32 %s324_s6, 4  ;;  %s347_s4 = sshll.u32 %s345_s27, 4  ;;  %s326_s24 = int_to_ptr.hbm [resolvable:$true] %s325_s24  ;;  %s348_s4 = int_to_ptr.hbm [resolvable:$true] %s347_s4 }
  0x52   : > { %1681 = dma.hbm_to_vmem [thread:$0]  (!%p2309_p5), %s326_s24, 4096, %s328_s10, %s2314_s19, %s2168_s13, %s2168_s13, %s2169_s26  }
  0x53   : > { %s341_s21 = scalar_lea.vmem [#allocation9], %s1627_s23  ;;  %s338_s9 = scalar_lea.sflag [#allocation10], %s2298_s17 }
  0x54   : > { %s349_s7 = sshll.u32 %s341_s21, 4  ;;  %358 = sbr.rel (%p2320_p8) target bundleno = 854 (0x356), region = 40  ;;  %s350_s7 = int_to_ptr.vmem [resolvable:$true] %s349_s7 }
  0x55   : > { %1684 = dma.hbm_to_vmem [thread:$0]  (!%p2309_p5), %s348_s4, 32, %s350_s7, %s338_s9  }
  0x56   : > { %s2438_s26 = sand.u32 (!%p2320_p8), 1, %s2139_s8  }
  0x57   : > { %s1630_s13 = sshll.u32 (!%p2320_p8), %s2438_s26, 7  ;;  %s361_s30 = scalar_lea.sflag (!%p2320_p8), [#allocation4], %s2438_s26 }
  0x58   : > { %s2442_s0 = scalar_lea.vmem (!%p2320_p8), [#allocation3], %s1630_s13 }
  0x59   : > { %2086 = dma.done.wait (%p2353_p4), %s361_s30, 2048  }
  0x5a   : > { %2088 = vsyncadd (%p2353_p4), %s361_s30, 4294965248  ;;  %s370_s5 = sand.u32 1, %s2325_s16   ;;  %s372_s17 = sand.u32 1, %s2127_s28  }
  0x5b   : > { %s1631_s19 = sshll.u32 %s372_s17, 8  ;;  %s371_s29 = scalar_lea.sflag [#allocation7], %s370_s5 }
  0x5c   : > { %s2452_s15 = scalar_lea.vmem [#allocation6], %s1631_s19  ;;  %p3042_p5 = scmp.ne.s32.totalorder %s3026_s1, 0 }
  0x5e   : > { %2090 = dma.done.wait (%p3042_p5), %s371_s29, 8192  }
  0x5f   : > { %2092 = vsyncadd (%p3042_p5), %s371_s29, 4294959104  ;;  %s1633_s10 = sshll.u32 %s372_s17, 1  ;;  %s2458_s24 = scalar_lea.vmem [#allocation8], %s1631_s19 }
  0x60   : > { %s391_s23 = scalar_lea.sflag [#allocation10], %s372_s17  ;;  %s2460_s20 = scalar_lea.vmem [#allocation9], %s1633_s10 }
  0x61   : > { %2094 = dma.done.wait (%p3042_p5), %s391_s23, 32  }
  0x62   : > { %2096 = vsyncadd (%p3042_p5), %s391_s23, 4294967264  ;;  %s441_s27 = sand.u32 1, %s2115_s25   ;;  %s2467_s21 = scalar_lea.vmem [#allocation11], %s1630_s13 }
  0x63   : > { %s1635_s4 = sshll.u32 %s441_s27, 8  ;;  %s2471_s9 = scalar_lea.vmem [#allocation14], %s1630_s13 }
  0x64   : > { %s2469_s7 = scalar_lea.vmem [#allocation12], %s1635_s4  ;;  %s3043_s18 = sld [smem:[#allocation25_spill]] }
  0x6a   : > { %p1637_p8 = scmp.ne.s32.totalorder %s3043_s18, 0 }
  0x6c   : > { %462 = sbr.rel (%p1637_p8) target bundleno = 146 (0x92), region = 60 }
  0x71   : > { %v2170_v0 = vmov 0.0   ;;  %vm479_vm0 = vcmask 7168  }
  0x72   : > { %463 = vst [vmem:[%s2467_s21] sm:$0xff] %v2170_v0 }
  0x73   : > { %464 = vst [vmem:[%s2467_s21 + $0x8] sm:$0xff] %v2170_v0 }
  0x74   : > { %465 = vst [vmem:[%s2467_s21 + $0x10] sm:$0xff] %v2170_v0 }
  0x75   : > { %466 = vst [vmem:[%s2467_s21 + $0x18] sm:$0xff] %v2170_v0 }
  0x76   : > { %467 = vst [vmem:[%s2467_s21 + $0x20] sm:$0xff] %v2170_v0 }
  0x77   : > { %468 = vst [vmem:[%s2467_s21 + $0x28] sm:$0xff] %v2170_v0 }
  0x78   : > { %469 = vst [vmem:[%s2467_s21 + $0x30] sm:$0xff] %v2170_v0 }
  0x79   : > { %470 = vst [vmem:[%s2467_s21 + $0x38] sm:$0xff] %v2170_v0 }
  0x7a   : > { %471 = vst [vmem:[%s2467_s21 + $0x40] sm:$0xff] %v2170_v0 }
  0x7b   : > { %472 = vst [vmem:[%s2467_s21 + $0x48] sm:$0xff] %v2170_v0 }
  0x7c   : > { %473 = vst [vmem:[%s2467_s21 + $0x50] sm:$0xff] %v2170_v0 }
  0x7d   : > { %474 = vst [vmem:[%s2467_s21 + $0x58] sm:$0xff] %v2170_v0 }
  0x7e   : > { %475 = vst [vmem:[%s2467_s21 + $0x60] sm:$0xff] %v2170_v0 }
  0x7f   : > { %476 = vst [vmem:[%s2467_s21 + $0x68] sm:$0xff] %v2170_v0 }
  0x80   : > { %477 = vst [vmem:[%s2467_s21 + $0x70] sm:$0xff] %v2170_v0 }
  0x81   : > { %478 = vst [vmem:[%s2467_s21 + $0x78] sm:$0xff] %v2170_v0 }
  0x82   : > { %480 = vst.msk [vmem:[#allocation2] sm:$0xff] %vm479_vm0, %v2170_v0 }
  0x83   : > { %481 = vst.msk [vmem:[#allocation2 + $0x8] sm:$0xff] %vm479_vm0, %v2170_v0 }
  0x84   : > { %482 = vst.msk [vmem:[#allocation2 + $0x10] sm:$0xff] %vm479_vm0, %v2170_v0 }
  0x85   : > { %483 = vst.msk [vmem:[#allocation2 + $0x18] sm:$0xff] %vm479_vm0, %v2170_v0 }
  0x86   : > { %484 = vst.msk [vmem:[#allocation2 + $0x20] sm:$0xff] %vm479_vm0, %v2170_v0 }
  0x87   : > { %485 = vst.msk [vmem:[#allocation2 + $0x28] sm:$0xff] %vm479_vm0, %v2170_v0 }
  0x88   : > { %486 = vst.msk [vmem:[#allocation2 + $0x30] sm:$0xff] %vm479_vm0, %v2170_v0 }
  0x89   : > { %487 = vst.msk [vmem:[#allocation2 + $0x38] sm:$0xff] %vm479_vm0, %v2170_v0 }
  0x8a   : > { %488 = vst.msk [vmem:[#allocation2 + $0x40] sm:$0xff] %vm479_vm0, %v2170_v0 }
  0x8b   : > { %489 = vst.msk [vmem:[#allocation2 + $0x48] sm:$0xff] %vm479_vm0, %v2170_v0 }
  0x8c   : > { %490 = vst.msk [vmem:[#allocation2 + $0x50] sm:$0xff] %vm479_vm0, %v2170_v0 }
  0x8d   : > { %491 = vst.msk [vmem:[#allocation2 + $0x58] sm:$0xff] %vm479_vm0, %v2170_v0 }
  0x8e   : > { %492 = vst.msk [vmem:[#allocation2 + $0x60] sm:$0xff] %vm479_vm0, %v2170_v0 }
  0x8f   : > { %493 = vst.msk [vmem:[#allocation2 + $0x68] sm:$0xff] %vm479_vm0, %v2170_v0 }
  0x90   : > { %494 = vst.msk [vmem:[#allocation2 + $0x70] sm:$0xff] %vm479_vm0, %v2170_v0 }
  0x91   : > { %495 = vst.msk [vmem:[#allocation2 + $0x78] sm:$0xff] %vm479_vm0, %v2170_v0 }
  0x92 PF: > { %v542_v1 = vld [vmem:[%s2452_s15 + $0xf0] sm:$0xff]  ;;  %v543_v2 = vld [vmem:[%s2452_s15 + $0xf8] sm:$0xff]  ;;  %v540_v3 = vld [vmem:[%s2452_s15 + $0xe0] sm:$0xff]  ;;  %vm824_vm1 = vcmask 7168   ;;  %s3044_s1 = sld [smem:[#allocation25_spill]] }
  0x93   : > { %550 = vmatpush.msra.mxu0 %v542_v1  ;;  %615 = vmatpush.msra.mxu1 %v543_v2  ;;  %v541_v4 = vld [vmem:[%s2452_s15 + $0xe8] sm:$0xff]  ;;  %v538_v5 = vld [vmem:[%s2452_s15 + $0xd0] sm:$0xff]  ;;  %v539_v6 = vld [vmem:[%s2452_s15 + $0xd8] sm:$0xff] }
  0x94   : > { %v536_v7 = vld [vmem:[%s2452_s15 + $0xc0] sm:$0xff]  ;;  %v537_v8 = vld [vmem:[%s2452_s15 + $0xc8] sm:$0xff]  ;;  %v534_v9 = vld [vmem:[%s2452_s15 + $0xb0] sm:$0xff] }
  0x95   : > { %551 = vmatpush.msra.mxu0 %v540_v3  ;;  %616 = vmatpush.msra.mxu1 %v541_v4  ;;  %v535_v10 = vld [vmem:[%s2452_s15 + $0xb8] sm:$0xff]  ;;  %v532_v11 = vld [vmem:[%s2452_s15 + $0xa0] sm:$0xff]  ;;  %v533_v12 = vld [vmem:[%s2452_s15 + $0xa8] sm:$0xff] }
  0x96   : > { %v530_v13 = vld [vmem:[%s2452_s15 + $0x90] sm:$0xff]  ;;  %v531_v14 = vld [vmem:[%s2452_s15 + $0x98] sm:$0xff]  ;;  %v528_v15 = vld [vmem:[%s2452_s15 + $0x80] sm:$0xff] }
  0x97   : > { %552 = vmatpush.msra.mxu0 %v538_v5  ;;  %617 = vmatpush.msra.mxu1 %v539_v6  ;;  %v529_v16 = vld [vmem:[%s2452_s15 + $0x88] sm:$0xff]  ;;  %v526_v17 = vld [vmem:[%s2452_s15 + $0x70] sm:$0xff]  ;;  %v527_v18 = vld [vmem:[%s2452_s15 + $0x78] sm:$0xff] }
  0x98   : > { %v524_v19 = vld [vmem:[%s2452_s15 + $0x60] sm:$0xff]  ;;  %v525_v20 = vld [vmem:[%s2452_s15 + $0x68] sm:$0xff]  ;;  %v522_v21 = vld [vmem:[%s2452_s15 + $0x50] sm:$0xff]  ;;  %p1638_p12 = scmp.ne.s32.totalorder %s3044_s1, 1 }
  0x99   : > { %553 = vmatpush.msra.mxu0 %v536_v7  ;;  %618 = vmatpush.msra.mxu1 %v537_v8  ;;  %v523_v22 = vld [vmem:[%s2452_s15 + $0x58] sm:$0xff]  ;;  %v520_v23 = vld [vmem:[%s2452_s15 + $0x40] sm:$0xff]  ;;  %v521_v24 = vld [vmem:[%s2452_s15 + $0x48] sm:$0xff]  ;;  %s3045_s30 = sld [smem:[#allocation40_spill]] (!%p1638_p12) }
  0x9a   : > { %v518_v25 = vld [vmem:[%s2452_s15 + $0x30] sm:$0xff]  ;;  %v519_v26 = vld [vmem:[%s2452_s15 + $0x38] sm:$0xff]  ;;  %v516_v27 = vld [vmem:[%s2452_s15 + $0x20] sm:$0xff] }
  0x9b   : > { %554 = vmatpush.msra.mxu0 %v534_v9  ;;  %619 = vmatpush.msra.mxu1 %v535_v10  ;;  %v517_v28 = vld [vmem:[%s2452_s15 + $0x28] sm:$0xff]  ;;  %v514_v29 = vld [vmem:[%s2452_s15 + $0x10] sm:$0xff]  ;;  %v515_v30 = vld [vmem:[%s2452_s15 + $0x18] sm:$0xff] }
  0x9c   : > { %v512_v31 = vld [vmem:[%s2452_s15] sm:$0xff]  ;;  %v513_v32 = vld [vmem:[%s2452_s15 + $0x8] sm:$0xff]  ;;  %v498_v35 = vld [vmem:[%s2442_s0 + $0x10] sm:$0xff] }
  0x9d   : > { %555 = vmatpush.msra.mxu0 %v532_v11  ;;  %620 = vmatpush.msra.mxu1 %v533_v12  ;;  %v496_v33 = vld [vmem:[%s2442_s0] sm:$0xff]  ;;  %v497_v34 = vld [vmem:[%s2442_s0 + $0x8] sm:$0xff]  ;;  %v499_v36 = vld [vmem:[%s2442_s0 + $0x18] sm:$0xff] }
  0x9e   : > { %v500_v37 = vld [vmem:[%s2442_s0 + $0x20] sm:$0xff]  ;;  %v501_v38 = vld [vmem:[%s2442_s0 + $0x28] sm:$0xff]  ;;  %v502_v39 = vld [vmem:[%s2442_s0 + $0x30] sm:$0xff] }
  0x9f   : > { %556 = vmatpush.msra.mxu0 %v530_v13  ;;  %621 = vmatpush.msra.mxu1 %v531_v14  ;;  %v503_v40 = vld [vmem:[%s2442_s0 + $0x38] sm:$0xff]  ;;  %v504_v41 = vld [vmem:[%s2442_s0 + $0x40] sm:$0xff]  ;;  %v871_v44 = vld [vmem:[%s2458_s24 + $0x70] sm:$0xff] }
  0xa0   : > { %v872_v42 = vld [vmem:[%s2458_s24 + $0x78] sm:$0xff]  ;;  %v887_v45 = vld [vmem:[%s2458_s24 + $0xf0] sm:$0xff]  ;;  %v870_v46 = vld [vmem:[%s2458_s24 + $0x68] sm:$0xff] }
  0xa1   : > { %557 = vmatpush.msra.mxu0 %v528_v15  ;;  %622 = vmatpush.msra.mxu1 %v529_v16  ;;  %v888_v43 = vld [vmem:[%s2458_s24 + $0xf8] sm:$0xff]  ;;  %v886_v47 = vld [vmem:[%s2458_s24 + $0xe8] sm:$0xff]  ;;  %v869_v49 = vld [vmem:[%s2458_s24 + $0x60] sm:$0xff] }
  0xa2   : > { %889 = vmatpush.msra.mxu2 %v872_v42  ;;  %954 = vmatpush.msra.mxu3 %v888_v43  ;;  %v505_v48 = vld [vmem:[%s2442_s0 + $0x48] sm:$0xff]  ;;  %v885_v50 = vld [vmem:[%s2458_s24 + $0xe0] sm:$0xff]  ;;  %v868_v51 = vld [vmem:[%s2458_s24 + $0x58] sm:$0xff] }
  0xa3   : > { %558 = vmatpush.msra.mxu0 %v526_v17  ;;  %623 = vmatpush.msra.mxu1 %v527_v18  ;;  %v884_v52 = vld [vmem:[%s2458_s24 + $0xd8] sm:$0xff]  ;;  %v867_v53 = vld [vmem:[%s2458_s24 + $0x50] sm:$0xff]  ;;  %v866_v55 = vld [vmem:[%s2458_s24 + $0x48] sm:$0xff] }
  0xa4   : > { %890 = vmatpush.msra.mxu2 %v871_v44  ;;  %955 = vmatpush.msra.mxu3 %v887_v45  ;;  %v883_v54 = vld [vmem:[%s2458_s24 + $0xd0] sm:$0xff]  ;;  %v882_v56 = vld [vmem:[%s2458_s24 + $0xc8] sm:$0xff]  ;;  %v865_v58 = vld [vmem:[%s2458_s24 + $0x40] sm:$0xff] }
  0xa5   : > { %559 = vmatpush.msra.mxu0 %v524_v19  ;;  %624 = vmatpush.msra.mxu1 %v525_v20  ;;  %v506_v57 = vld [vmem:[%s2442_s0 + $0x50] sm:$0xff]  ;;  %v881_v59 = vld [vmem:[%s2458_s24 + $0xc0] sm:$0xff]  ;;  %v864_v60 = vld [vmem:[%s2458_s24 + $0x38] sm:$0xff] }
  0xa6   : > { %891 = vmatpush.msra.mxu2 %v870_v46  ;;  %956 = vmatpush.msra.mxu3 %v886_v47  ;;  %v880_v61 = vld [vmem:[%s2458_s24 + $0xb8] sm:$0xff]  ;;  %v863_v62 = vld [vmem:[%s2458_s24 + $0x30] sm:$0xff]  ;;  %v862_v0 = vld [vmem:[%s2458_s24 + $0x28] sm:$0xff] }
  0xa7   : > { %560 = vmatpush.msra.mxu0 %v522_v21  ;;  %625 = vmatpush.msra.mxu1 %v523_v22  ;;  %v879_v63 = vld [vmem:[%s2458_s24 + $0xb0] sm:$0xff]  ;;  %v878_v1 = vld [vmem:[%s2458_s24 + $0xa8] sm:$0xff]  ;;  %v507_v2 = vld [vmem:[%s2442_s0 + $0x58] sm:$0xff] }
  0xa8   : > { %892 = vmatpush.msra.mxu2 %v869_v49  ;;  %957 = vmatpush.msra.mxu3 %v885_v50  ;;  %v861_v3 = vld [vmem:[%s2458_s24 + $0x20] sm:$0xff]  ;;  %v860_v5 = vld [vmem:[%s2458_s24 + $0x18] sm:$0xff]  ;;  %v859_v8 = vld [vmem:[%s2458_s24 + $0x10] sm:$0xff] }
  0xa9   : > { %561 = vmatpush.msra.mxu0 %v520_v23  ;;  %626 = vmatpush.msra.mxu1 %v521_v24  ;;  %v877_v4 = vld [vmem:[%s2458_s24 + $0xa0] sm:$0xff]  ;;  %v876_v6 = vld [vmem:[%s2458_s24 + $0x98] sm:$0xff]  ;;  %v875_v9 = vld [vmem:[%s2458_s24 + $0x90] sm:$0xff] }
  0xaa   : > { %893 = vmatpush.msra.mxu2 %v868_v51  ;;  %958 = vmatpush.msra.mxu3 %v884_v52  ;;  %v508_v7 = vld [vmem:[%s2442_s0 + $0x60] sm:$0xff]  ;;  %v858_v10 = vld [vmem:[%s2458_s24 + $0x8] sm:$0xff]  ;;  %v510_v15 = vld [vmem:[%s2442_s0 + $0x70] sm:$0xff] }
  0xab   : > { %562 = vmatpush.msra.mxu0 %v518_v25  ;;  %627 = vmatpush.msra.mxu1 %v519_v26  ;;  %v874_v11 = vld [vmem:[%s2458_s24 + $0x88] sm:$0xff]  ;;  %v857_v12 = vld [vmem:[%s2458_s24] sm:$0xff]  ;;  %v511_v16 = vld [vmem:[%s2442_s0 + $0x78] sm:$0xff] }
  0xac   : > { %894 = vmatpush.msra.mxu2 %v867_v53  ;;  %959 = vmatpush.msra.mxu3 %v883_v54  ;;  %v873_v13 = vld [vmem:[%s2458_s24 + $0x80] sm:$0xff]  ;;  %v509_v14 = vld [vmem:[%s2442_s0 + $0x68] sm:$0xff] }
  0xad   : > { %563 = vmatpush.msra.mxu0 %v516_v27  ;;  %628 = vmatpush.msra.mxu1 %v517_v28  ;;  %v544_v17 = vld [vmem:[%s2460_s20] sm:$0x3] }
  0xae   : > { %895 = vmatpush.msra.mxu2 %v866_v55  ;;  %960 = vmatpush.msra.mxu3 %v882_v56  ;;  %v2587_v18 = vperm.slane %v544_v17, 0  ;;  %v2589_v19 = vperm.slane %v544_v17, 1 }
  0xaf   : > { %564 = vmatpush.msra.mxu0 %v514_v29  ;;  %629 = vmatpush.msra.mxu1 %v515_v30 }
  0xb0   : > { %896 = vmatpush.msra.mxu2 %v865_v58  ;;  %961 = vmatpush.msra.mxu3 %v881_v59 }
  0xb1   : > { %565 = vmatpush.msra.mxu0 %v512_v31  ;;  %630 = vmatpush.msra.mxu1 %v513_v32 }
  0xb2   : > { %566 = vmatmul.f32.vlgmr.msra.gmra.mxu0 %v496_v33  ;;  %631 = vmatmul.f32.vlgmr.msra.gmra.mxu1 %v496_v33 }
  0xb3   : > { %897 = vmatpush.msra.mxu2 %v864_v60  ;;  %962 = vmatpush.msra.mxu3 %v880_v61 }
  0xb5   : > { %898 = vmatpush.msra.mxu2 %v863_v62  ;;  %963 = vmatpush.msra.mxu3 %v879_v63 }
  0xb7   : > { %899 = vmatpush.msra.mxu2 %v862_v0  ;;  %964 = vmatpush.msra.mxu3 %v878_v1 }
  0xb9   : > { %900 = vmatpush.msra.mxu2 %v861_v3  ;;  %965 = vmatpush.msra.mxu3 %v877_v4 }
  0xba   : > { %569 = vmatmul.f32.gmra.mxu0 %v497_v34  ;;  %634 = vmatmul.f32.gmra.mxu1 %v497_v34 }
  0xbb   : > { %901 = vmatpush.msra.mxu2 %v860_v5  ;;  %966 = vmatpush.msra.mxu3 %v876_v6 }
  0xbd   : > { %902 = vmatpush.msra.mxu2 %v859_v8  ;;  %967 = vmatpush.msra.mxu3 %v875_v9 }
  0xbf   : > { %903 = vmatpush.msra.mxu2 %v858_v10  ;;  %968 = vmatpush.msra.mxu3 %v874_v11 }
  0xc1   : > { %904 = vmatpush.msra.mxu2 %v857_v12  ;;  %969 = vmatpush.msra.mxu3 %v873_v13 }
  0xc2   : > { %572 = vmatmul.f32.gmra.mxu0 %v498_v35  ;;  %637 = vmatmul.f32.gmra.mxu1 %v498_v35 }
  0xca   : > { %575 = vmatmul.f32.gmra.mxu0 %v499_v36  ;;  %640 = vmatmul.f32.gmra.mxu1 %v499_v36 }
  0xd2   : > { %578 = vmatmul.f32.gmra.mxu0 %v500_v37  ;;  %643 = vmatmul.f32.gmra.mxu1 %v500_v37 }
  0xda   : > { %581 = vmatmul.f32.gmra.mxu0 %v501_v38  ;;  %646 = vmatmul.f32.gmra.mxu1 %v501_v38 }
  0xe2   : > { %584 = vmatmul.f32.gmra.mxu0 %v502_v39  ;;  %649 = vmatmul.f32.gmra.mxu1 %v502_v39 }
  0xea   : > { %587 = vmatmul.f32.gmra.mxu0 %v503_v40  ;;  %652 = vmatmul.f32.gmra.mxu1 %v503_v40 }
  0xf2   : > { %590 = vmatmul.f32.gmra.mxu0 %v504_v41  ;;  %655 = vmatmul.f32.gmra.mxu1 %v504_v41 }
  0xfa   : > { %593 = vmatmul.f32.gmra.mxu0 %v505_v48  ;;  %658 = vmatmul.f32.gmra.mxu1 %v505_v48 }
 0x102   : > { %596 = vmatmul.f32.gmra.mxu0 %v506_v57  ;;  %661 = vmatmul.f32.gmra.mxu1 %v506_v57 }
 0x10a   : > { %599 = vmatmul.f32.gmra.mxu0 %v507_v2  ;;  %664 = vmatmul.f32.gmra.mxu1 %v507_v2 }
 0x112   : > { %602 = vmatmul.f32.gmra.mxu0 %v508_v7  ;;  %667 = vmatmul.f32.gmra.mxu1 %v508_v7 }
 0x11a   : > { %605 = vmatmul.f32.gmra.mxu0 %v509_v14  ;;  %670 = vmatmul.f32.gmra.mxu1 %v509_v14 }
 0x122   : > { %608 = vmatmul.f32.gmra.mxu0 %v510_v15  ;;  %673 = vmatmul.f32.gmra.mxu1 %v510_v15 }
 0x12a   : > { %611 = vmatmul.f32.gmra.mxu0 %v511_v16  ;;  %676 = vmatmul.f32.gmra.mxu1 %v511_v16 }
 0x12f   : > { %v567_v20 = vpop.f32.mrf.mxu0  ;;  %v632_v21 = vpop.f32.mrf.mxu1 }
 0x130   : > { %v568_v22 = vadd.f32 %v567_v20, %v2587_v18  ;;  %v633_v23 = vadd.f32 %v632_v21, %v2589_v19 }
 0x132   : > { %v680_v24 = vmax.f32 %v568_v22, 0.0  ;;  %v681_v25 = vmax.f32 %v633_v23, 0.0 }
 0x134   : > { %712 = vst [vmem:[%s2469_s7] sm:$0xff] %v680_v24  ;;  %905 = vmatmul.f32.vlgmr.msra.gmra.mxu2 %v680_v24  ;;  %970 = vmatmul.f32.vlgmr.msra.gmra.mxu3 %v681_v25  ;;  %v760_v26 = vadd.f32 %v681_v25, %v680_v24 }
 0x135   : > { %713 = vst [vmem:[%s2469_s7 + $0x8] sm:$0xff] %v681_v25 }
 0x136   : > { %761 = vadd.xlane.f32.xlu0 %v760_v26 }
 0x137   : > { %v570_v27 = vpop.f32.mrf.mxu0  ;;  %v635_v28 = vpop.f32.mrf.mxu1 }
 0x138   : > { %v571_v29 = vadd.f32 %v570_v27, %v2587_v18  ;;  %v636_v30 = vadd.f32 %v635_v28, %v2589_v19 }
 0x13a   : > { %v682_v31 = vmax.f32 %v571_v29, 0.0  ;;  %v683_v32 = vmax.f32 %v636_v30, 0.0 }
 0x13c   : > { %714 = vst [vmem:[%s2469_s7 + $0x10] sm:$0xff] %v682_v31  ;;  %908 = vmatmul.f32.gmra.mxu2 %v682_v31  ;;  %973 = vmatmul.f32.gmra.mxu3 %v683_v32  ;;  %v763_v33 = vadd.f32 %v683_v32, %v682_v31 }
 0x13d   : > { %715 = vst [vmem:[%s2469_s7 + $0x18] sm:$0xff] %v683_v32 }
 0x13e   : > { %764 = vadd.xlane.f32.xlu0 %v763_v33 }
 0x13f   : > { %v573_v34 = vpop.f32.mrf.mxu0  ;;  %v638_v35 = vpop.f32.mrf.mxu1 }
 0x140   : > { %v574_v36 = vadd.f32 %v573_v34, %v2587_v18  ;;  %v639_v37 = vadd.f32 %v638_v35, %v2589_v19 }
 0x142   : > { %v684_v38 = vmax.f32 %v574_v36, 0.0  ;;  %v685_v39 = vmax.f32 %v639_v37, 0.0 }
 0x144   : > { %716 = vst [vmem:[%s2469_s7 + $0x20] sm:$0xff] %v684_v38  ;;  %911 = vmatmul.f32.gmra.mxu2 %v684_v38  ;;  %976 = vmatmul.f32.gmra.mxu3 %v685_v39  ;;  %v766_v40 = vadd.f32 %v685_v39, %v684_v38 }
 0x145   : > { %717 = vst [vmem:[%s2469_s7 + $0x28] sm:$0xff] %v685_v39 }
 0x146   : > { %767 = vadd.xlane.f32.xlu1 %v766_v40 }
 0x147   : > { %v576_v41 = vpop.f32.mrf.mxu0  ;;  %v641_v42 = vpop.f32.mrf.mxu1 }
 0x148   : > { %v577_v43 = vadd.f32 %v576_v41, %v2587_v18  ;;  %v642_v44 = vadd.f32 %v641_v42, %v2589_v19 }
 0x14a   : > { %v686_v45 = vmax.f32 %v577_v43, 0.0  ;;  %v687_v46 = vmax.f32 %v642_v44, 0.0 }
 0x14c   : > { %718 = vst [vmem:[%s2469_s7 + $0x30] sm:$0xff] %v686_v45  ;;  %914 = vmatmul.f32.gmra.mxu2 %v686_v45  ;;  %979 = vmatmul.f32.gmra.mxu3 %v687_v46  ;;  %v769_v47 = vadd.f32 %v687_v46, %v686_v45 }
 0x14d   : > { %719 = vst [vmem:[%s2469_s7 + $0x38] sm:$0xff] %v687_v46 }
 0x14e   : > { %770 = vadd.xlane.f32.xlu1 %v769_v47 }
 0x14f   : > { %v579_v48 = vpop.f32.mrf.mxu0  ;;  %v644_v49 = vpop.f32.mrf.mxu1 }
 0x150   : > { %v580_v50 = vadd.f32 %v579_v48, %v2587_v18  ;;  %v645_v51 = vadd.f32 %v644_v49, %v2589_v19 }
 0x152   : > { %v688_v52 = vmax.f32 %v580_v50, 0.0  ;;  %v689_v53 = vmax.f32 %v645_v51, 0.0 }
 0x154   : > { %720 = vst [vmem:[%s2469_s7 + $0x40] sm:$0xff] %v688_v52  ;;  %917 = vmatmul.f32.gmra.mxu2 %v688_v52  ;;  %982 = vmatmul.f32.gmra.mxu3 %v689_v53  ;;  %v772_v54 = vadd.f32 %v689_v53, %v688_v52 }
 0x155   : > { %721 = vst [vmem:[%s2469_s7 + $0x48] sm:$0xff] %v689_v53 }
 0x156   : > { %773 = vadd.xlane.f32.xlu2 %v772_v54 }
 0x157   : > { %v582_v55 = vpop.f32.mrf.mxu0  ;;  %v647_v56 = vpop.f32.mrf.mxu1 }
 0x158   : > { %v583_v57 = vadd.f32 %v582_v55, %v2587_v18  ;;  %v648_v58 = vadd.f32 %v647_v56, %v2589_v19 }
 0x15a   : > { %v690_v59 = vmax.f32 %v583_v57, 0.0  ;;  %v691_v60 = vmax.f32 %v648_v58, 0.0 }
 0x15c   : > { %722 = vst [vmem:[%s2469_s7 + $0x50] sm:$0xff] %v690_v59  ;;  %920 = vmatmul.f32.gmra.mxu2 %v690_v59  ;;  %985 = vmatmul.f32.gmra.mxu3 %v691_v60  ;;  %v775_v61 = vadd.f32 %v691_v60, %v690_v59 }
 0x15d   : > { %723 = vst [vmem:[%s2469_s7 + $0x58] sm:$0xff] %v691_v60 }
 0x15e   : > { %776 = vadd.xlane.f32.xlu2 %v775_v61 }
 0x15f   : > { %v585_v62 = vpop.f32.mrf.mxu0  ;;  %v650_v63 = vpop.f32.mrf.mxu1 }
 0x160   : > { %v586_v0 = vadd.f32 %v585_v62, %v2587_v18  ;;  %v651_v1 = vadd.f32 %v650_v63, %v2589_v19 }
 0x162   : > { %v692_v2 = vmax.f32 %v586_v0, 0.0  ;;  %v693_v3 = vmax.f32 %v651_v1, 0.0  ;;  %v744_v1 = vld [vmem:[#allocation2] sm:$0xff] }
 0x164   : > { %724 = vst [vmem:[%s2469_s7 + $0x60] sm:$0xff] %v692_v2  ;;  %923 = vmatmul.f32.gmra.mxu2 %v692_v2  ;;  %988 = vmatmul.f32.gmra.mxu3 %v693_v3  ;;  %v778_v4 = vadd.f32 %v693_v3, %v692_v2 }
 0x165   : > { %725 = vst [vmem:[%s2469_s7 + $0x68] sm:$0xff] %v693_v3 }
 0x166   : > { %779 = vadd.xlane.f32.xlu0 %v778_v4 }
 0x167   : > { %v588_v5 = vpop.f32.mrf.mxu0  ;;  %v653_v6 = vpop.f32.mrf.mxu1 }
 0x168   : > { %v589_v7 = vadd.f32 %v588_v5, %v2587_v18  ;;  %v654_v8 = vadd.f32 %v653_v6, %v2589_v19 }
 0x16a   : > { %v694_v9 = vmax.f32 %v589_v7, 0.0  ;;  %v695_v10 = vmax.f32 %v654_v8, 0.0 }
 0x16c   : > { %726 = vst [vmem:[%s2469_s7 + $0x70] sm:$0xff] %v694_v9  ;;  %926 = vmatmul.f32.gmra.mxu2 %v694_v9  ;;  %991 = vmatmul.f32.gmra.mxu3 %v695_v10  ;;  %v781_v11 = vadd.f32 %v695_v10, %v694_v9  ;;  %v745_v9 = vld [vmem:[#allocation2 + $0x8] sm:$0xff] }
 0x16d   : > { %727 = vst [vmem:[%s2469_s7 + $0x78] sm:$0xff] %v695_v10 }
 0x16e   : > { %782 = vadd.xlane.f32.xlu1 %v781_v11  ;;  %v841_v11 = vld [vmem:[%s2467_s21] sm:$0xff] }
 0x16f   : > { %v591_v12 = vpop.f32.mrf.mxu0  ;;  %v656_v13 = vpop.f32.mrf.mxu1 }
 0x170   : > { %v592_v14 = vadd.f32 %v591_v12, %v2587_v18  ;;  %v657_v15 = vadd.f32 %v656_v13, %v2589_v19  ;;  %v746_v13 = vld [vmem:[#allocation2 + $0x10] sm:$0xff] }
 0x172   : > { %v696_v16 = vmax.f32 %v592_v14, 0.0  ;;  %v697_v17 = vmax.f32 %v657_v15, 0.0 }
 0x174   : > { %728 = vst [vmem:[%s2469_s7 + $0x80] sm:$0xff] %v696_v16  ;;  %929 = vmatmul.f32.gmra.mxu2 %v696_v16  ;;  %994 = vmatmul.f32.gmra.mxu3 %v697_v17  ;;  %v784_v20 = vadd.f32 %v697_v17, %v696_v16 }
 0x175   : > { %729 = vst [vmem:[%s2469_s7 + $0x88] sm:$0xff] %v697_v17 }
 0x176   : > { %785 = vadd.xlane.f32.xlu2 %v784_v20 }
 0x177   : > { %v594_v21 = vpop.f32.mrf.mxu0  ;;  %v659_v22 = vpop.f32.mrf.mxu1 }
 0x178   : > { %v595_v23 = vadd.f32 %v594_v21, %v2587_v18  ;;  %v660_v24 = vadd.f32 %v659_v22, %v2589_v19  ;;  %v842_v21 = vld [vmem:[%s2467_s21 + $0x8] sm:$0xff] }
 0x17a   : > { %v698_v25 = vmax.f32 %v595_v23, 0.0  ;;  %v699_v26 = vmax.f32 %v660_v24, 0.0  ;;  %v747_v23 = vld [vmem:[#allocation2 + $0x18] sm:$0xff] }
 0x17c   : > { %730 = vst [vmem:[%s2469_s7 + $0x90] sm:$0xff] %v698_v25  ;;  %932 = vmatmul.f32.gmra.mxu2 %v698_v25  ;;  %997 = vmatmul.f32.gmra.mxu3 %v699_v26  ;;  %v787_v27 = vadd.f32 %v699_v26, %v698_v25 }
 0x17d   : > { %731 = vst [vmem:[%s2469_s7 + $0x98] sm:$0xff] %v699_v26 }
 0x17e   : > { %788 = vadd.xlane.f32.xlu0 %v787_v27 }
 0x17f   : > { %v597_v28 = vpop.f32.mrf.mxu0  ;;  %v662_v29 = vpop.f32.mrf.mxu1 }
 0x180   : > { %v598_v30 = vadd.f32 %v597_v28, %v2587_v18  ;;  %v663_v31 = vadd.f32 %v662_v29, %v2589_v19  ;;  %v843_v29 = vld [vmem:[%s2467_s21 + $0x10] sm:$0xff] }
 0x182   : > { %v700_v32 = vmax.f32 %v598_v30, 0.0  ;;  %v701_v33 = vmax.f32 %v663_v31, 0.0  ;;  %v748_v31 = vld [vmem:[#allocation2 + $0x20] sm:$0xff] }
 0x184   : > { %732 = vst [vmem:[%s2469_s7 + $0xa0] sm:$0xff] %v700_v32  ;;  %935 = vmatmul.f32.gmra.mxu2 %v700_v32  ;;  %1000 = vmatmul.f32.gmra.mxu3 %v701_v33  ;;  %v790_v34 = vadd.f32 %v701_v33, %v700_v32 }
 0x185   : > { %733 = vst [vmem:[%s2469_s7 + $0xa8] sm:$0xff] %v701_v33 }
 0x186   : > { %791 = vadd.xlane.f32.xlu1 %v790_v34 }
 0x187   : > { %v600_v35 = vpop.f32.mrf.mxu0  ;;  %v665_v36 = vpop.f32.mrf.mxu1 }
 0x188   : > { %v601_v37 = vadd.f32 %v600_v35, %v2587_v18  ;;  %v666_v38 = vadd.f32 %v665_v36, %v2589_v19 }
 0x18a   : > { %v702_v39 = vmax.f32 %v601_v37, 0.0  ;;  %v703_v40 = vmax.f32 %v666_v38, 0.0  ;;  %v844_v37 = vld [vmem:[%s2467_s21 + $0x18] sm:$0xff] }
 0x18c   : > { %734 = vst [vmem:[%s2469_s7 + $0xb0] sm:$0xff] %v702_v39  ;;  %938 = vmatmul.f32.gmra.mxu2 %v702_v39  ;;  %1003 = vmatmul.f32.gmra.mxu3 %v703_v40  ;;  %v793_v41 = vadd.f32 %v703_v40, %v702_v39  ;;  %v749_v39 = vld [vmem:[#allocation2 + $0x28] sm:$0xff] }
 0x18d   : > { %735 = vst [vmem:[%s2469_s7 + $0xb8] sm:$0xff] %v703_v40 }
 0x18e   : > { %794 = vadd.xlane.f32.xlu2 %v793_v41 }
 0x18f   : > { %v603_v42 = vpop.f32.mrf.mxu0  ;;  %v668_v43 = vpop.f32.mrf.mxu1 }
 0x190   : > { %v604_v44 = vadd.f32 %v603_v42, %v2587_v18  ;;  %v669_v45 = vadd.f32 %v668_v43, %v2589_v19 }
 0x192   : > { %v704_v46 = vmax.f32 %v604_v44, 0.0  ;;  %v705_v47 = vmax.f32 %v669_v45, 0.0  ;;  %v845_v45 = vld [vmem:[%s2467_s21 + $0x20] sm:$0xff] }
 0x194   : > { %736 = vst [vmem:[%s2469_s7 + $0xc0] sm:$0xff] %v704_v46  ;;  %941 = vmatmul.f32.gmra.mxu2 %v704_v46  ;;  %1006 = vmatmul.f32.gmra.mxu3 %v705_v47  ;;  %v796_v48 = vadd.f32 %v705_v47, %v704_v46 }
 0x195   : > { %737 = vst [vmem:[%s2469_s7 + $0xc8] sm:$0xff] %v705_v47  ;;  %v750_v47 = vld [vmem:[#allocation2 + $0x30] sm:$0xff] }
 0x196   : > { %797 = vadd.xlane.f32.xlu0 %v796_v48 }
 0x197   : > { %v606_v49 = vpop.f32.mrf.mxu0  ;;  %v671_v50 = vpop.f32.mrf.mxu1 }
 0x198   : > { %v607_v51 = vadd.f32 %v606_v49, %v2587_v18  ;;  %v672_v52 = vadd.f32 %v671_v50, %v2589_v19 }
 0x19a   : > { %v706_v53 = vmax.f32 %v607_v51, 0.0  ;;  %v707_v54 = vmax.f32 %v672_v52, 0.0 }
 0x19c   : > { %738 = vst [vmem:[%s2469_s7 + $0xd0] sm:$0xff] %v706_v53  ;;  %944 = vmatmul.f32.gmra.mxu2 %v706_v53  ;;  %1009 = vmatmul.f32.gmra.mxu3 %v707_v54  ;;  %v799_v55 = vadd.f32 %v707_v54, %v706_v53  ;;  %v846_v53 = vld [vmem:[%s2467_s21 + $0x28] sm:$0xff] }
 0x19d   : > { %739 = vst [vmem:[%s2469_s7 + $0xd8] sm:$0xff] %v707_v54 }
 0x19e   : > { %800 = vadd.xlane.f32.xlu1 %v799_v55  ;;  %v751_v55 = vld [vmem:[#allocation2 + $0x38] sm:$0xff] }
 0x19f   : > { %v609_v56 = vpop.f32.mrf.mxu0  ;;  %v674_v57 = vpop.f32.mrf.mxu1 }
 0x1a0   : > { %v610_v58 = vadd.f32 %v609_v56, %v2587_v18  ;;  %v675_v59 = vadd.f32 %v674_v57, %v2589_v19 }
 0x1a2   : > { %v708_v60 = vmax.f32 %v610_v58, 0.0  ;;  %v709_v61 = vmax.f32 %v675_v59, 0.0 }
 0x1a4   : > { %740 = vst [vmem:[%s2469_s7 + $0xe0] sm:$0xff] %v708_v60  ;;  %947 = vmatmul.f32.gmra.mxu2 %v708_v60  ;;  %1012 = vmatmul.f32.gmra.mxu3 %v709_v61  ;;  %v802_v62 = vadd.f32 %v709_v61, %v708_v60 }
 0x1a5   : > { %741 = vst [vmem:[%s2469_s7 + $0xe8] sm:$0xff] %v709_v61  ;;  %v847_v61 = vld [vmem:[%s2467_s21 + $0x30] sm:$0xff] }
 0x1a6   : > { %803 = vadd.xlane.f32.xlu2 %v802_v62 }
 0x1a7   : > { %v612_v63 = vpop.f32.mrf.mxu0  ;;  %v677_v0 = vpop.f32.mrf.mxu1 }
 0x1a8   : > { %v613_v2 = vadd.f32 %v612_v63, %v2587_v18  ;;  %v678_v3 = vadd.f32 %v677_v0, %v2589_v19  ;;  %v752_v63 = vld [vmem:[#allocation2 + $0x40] sm:$0xff] }
 0x1a9   : > { %v762_v4 = vpop.xlane.xlu0 %761 }
 0x1aa   : > { %v710_v5 = vmax.f32 %v613_v2, 0.0  ;;  %v711_v6 = vmax.f32 %v678_v3, 0.0  ;;  %v808_v7 = vadd.f32 %v762_v4, %v744_v1 }
 0x1ac   : > { %742 = vst [vmem:[%s2469_s7 + $0xf0] sm:$0xff] %v710_v5  ;;  %950 = vmatmul.f32.gmra.mxu2 %v710_v5  ;;  %1015 = vmatmul.f32.gmra.mxu3 %v711_v6  ;;  %v805_v8 = vadd.f32 %v711_v6, %v710_v5  ;;  %v848_v5 = vld [vmem:[%s2467_s21 + $0x38] sm:$0xff] }
 0x1ad   : > { %743 = vst [vmem:[%s2469_s7 + $0xf8] sm:$0xff] %v711_v6 }
 0x1ae   : > { %825 = vst.msk [vmem:[#allocation2] sm:$0xff] %vm824_vm1, %v808_v7  ;;  %806 = vadd.xlane.f32.xlu0 %v805_v8  ;;  %v753_v7 = vld [vmem:[#allocation2 + $0x48] sm:$0xff] }
 0x1b1   : > { %v765_v18 = vpop.xlane.xlu0 %764 }
 0x1b2   : > { %v809_v10 = vadd.f32 %v765_v18, %v745_v9 }
 0x1b4   : > { %826 = vst.msk [vmem:[#allocation2 + $0x8] sm:$0xff] %vm824_vm1, %v809_v10 }
 0x1b7   : > { %v906_v19 = vpop.f32.mrf.mxu2  ;;  %v971_v12 = vpop.f32.mrf.mxu3 }
 0x1b8   : > { %v972_v14 = vadd.f32 %v971_v12, %v906_v19 }
 0x1b9   : > { %v768_v15 = vpop.xlane.xlu1 %767 }
 0x1ba   : > { %v1019_v16 = vadd.f32 %v972_v14, %v841_v11  ;;  %v810_v17 = vadd.f32 %v768_v15, %v746_v13  ;;  %v849_v11 = vld [vmem:[%s2467_s21 + $0x40] sm:$0xff]  ;;  %v754_v13 = vld [vmem:[#allocation2 + $0x50] sm:$0xff] }
 0x1bc   : > { %1035 = vst [vmem:[%s2467_s21] sm:$0xff] %v1019_v16 }
 0x1bd   : > { %827 = vst.msk [vmem:[#allocation2 + $0x10] sm:$0xff] %vm824_vm1, %v810_v17 }
 0x1bf   : > { %v909_v20 = vpop.f32.mrf.mxu2  ;;  %v974_v22 = vpop.f32.mrf.mxu3 }
 0x1c0   : > { %v975_v24 = vadd.f32 %v974_v22, %v909_v20 }
 0x1c1   : > { %v771_v25 = vpop.xlane.xlu1 %770 }
 0x1c2   : > { %v1020_v26 = vadd.f32 %v975_v24, %v842_v21  ;;  %v811_v27 = vadd.f32 %v771_v25, %v747_v23  ;;  %v850_v21 = vld [vmem:[%s2467_s21 + $0x48] sm:$0xff]  ;;  %v755_v23 = vld [vmem:[#allocation2 + $0x58] sm:$0xff] }
 0x1c4   : > { %1036 = vst [vmem:[%s2467_s21 + $0x8] sm:$0xff] %v1020_v26 }
 0x1c5   : > { %828 = vst.msk [vmem:[#allocation2 + $0x18] sm:$0xff] %vm824_vm1, %v811_v27 }
 0x1c7   : > { %v912_v28 = vpop.f32.mrf.mxu2  ;;  %v977_v30 = vpop.f32.mrf.mxu3 }
 0x1c8   : > { %v978_v32 = vadd.f32 %v977_v30, %v912_v28 }
 0x1c9   : > { %v774_v33 = vpop.xlane.xlu2 %773 }
 0x1ca   : > { %v1021_v34 = vadd.f32 %v978_v32, %v843_v29  ;;  %v812_v35 = vadd.f32 %v774_v33, %v748_v31  ;;  %v851_v29 = vld [vmem:[%s2467_s21 + $0x50] sm:$0xff]  ;;  %v756_v31 = vld [vmem:[#allocation2 + $0x60] sm:$0xff] }
 0x1cc   : > { %1037 = vst [vmem:[%s2467_s21 + $0x10] sm:$0xff] %v1021_v34 }
 0x1cd   : > { %829 = vst.msk [vmem:[#allocation2 + $0x20] sm:$0xff] %vm824_vm1, %v812_v35 }
 0x1cf   : > { %v915_v36 = vpop.f32.mrf.mxu2  ;;  %v980_v38 = vpop.f32.mrf.mxu3 }
 0x1d0   : > { %v981_v40 = vadd.f32 %v980_v38, %v915_v36 }
 0x1d1   : > { %v777_v41 = vpop.xlane.xlu2 %776 }
 0x1d2   : > { %v1022_v42 = vadd.f32 %v981_v40, %v844_v37  ;;  %v813_v43 = vadd.f32 %v777_v41, %v749_v39  ;;  %v852_v37 = vld [vmem:[%s2467_s21 + $0x58] sm:$0xff]  ;;  %v757_v39 = vld [vmem:[#allocation2 + $0x68] sm:$0xff] }
 0x1d4   : > { %1038 = vst [vmem:[%s2467_s21 + $0x18] sm:$0xff] %v1022_v42 }
 0x1d5   : > { %830 = vst.msk [vmem:[#allocation2 + $0x28] sm:$0xff] %vm824_vm1, %v813_v43 }
 0x1d7   : > { %v918_v44 = vpop.f32.mrf.mxu2  ;;  %v983_v46 = vpop.f32.mrf.mxu3 }
 0x1d8   : > { %v984_v48 = vadd.f32 %v983_v46, %v918_v44 }
 0x1d9   : > { %v780_v49 = vpop.xlane.xlu0 %779 }
 0x1da   : > { %v1023_v50 = vadd.f32 %v984_v48, %v845_v45  ;;  %v814_v51 = vadd.f32 %v780_v49, %v750_v47  ;;  %v853_v45 = vld [vmem:[%s2467_s21 + $0x60] sm:$0xff]  ;;  %v758_v47 = vld [vmem:[#allocation2 + $0x70] sm:$0xff] }
 0x1dc   : > { %1039 = vst [vmem:[%s2467_s21 + $0x20] sm:$0xff] %v1023_v50 }
 0x1dd   : > { %831 = vst.msk [vmem:[#allocation2 + $0x30] sm:$0xff] %vm824_vm1, %v814_v51 }
 0x1df   : > { %v921_v52 = vpop.f32.mrf.mxu2  ;;  %v986_v54 = vpop.f32.mrf.mxu3 }
 0x1e0   : > { %v987_v56 = vadd.f32 %v986_v54, %v921_v52 }
 0x1e1   : > { %v783_v57 = vpop.xlane.xlu1 %782 }
 0x1e2   : > { %v1024_v58 = vadd.f32 %v987_v56, %v846_v53  ;;  %v815_v59 = vadd.f32 %v783_v57, %v751_v55  ;;  %v854_v53 = vld [vmem:[%s2467_s21 + $0x68] sm:$0xff]  ;;  %v759_v55 = vld [vmem:[#allocation2 + $0x78] sm:$0xff] }
 0x1e4   : > { %1040 = vst [vmem:[%s2467_s21 + $0x28] sm:$0xff] %v1024_v58 }
 0x1e5   : > { %832 = vst.msk [vmem:[#allocation2 + $0x38] sm:$0xff] %vm824_vm1, %v815_v59 }
 0x1e7   : > { %v924_v60 = vpop.f32.mrf.mxu2  ;;  %v989_v62 = vpop.f32.mrf.mxu3 }
 0x1e8   : > { %v990_v0 = vadd.f32 %v989_v62, %v924_v60 }
 0x1e9   : > { %v786_v1 = vpop.xlane.xlu2 %785 }
 0x1ea   : > { %v1025_v2 = vadd.f32 %v990_v0, %v847_v61  ;;  %v816_v3 = vadd.f32 %v786_v1, %v752_v63  ;;  %v855_v61 = vld [vmem:[%s2467_s21 + $0x70] sm:$0xff] }
 0x1ec   : > { %1041 = vst [vmem:[%s2467_s21 + $0x30] sm:$0xff] %v1025_v2  ;;  %v856_v2 = vld [vmem:[%s2467_s21 + $0x78] sm:$0xff] }
 0x1ed   : > { %833 = vst.msk [vmem:[#allocation2 + $0x40] sm:$0xff] %vm824_vm1, %v816_v3 }
 0x1ef   : > { %v927_v4 = vpop.f32.mrf.mxu2  ;;  %v992_v6 = vpop.f32.mrf.mxu3 }
 0x1f0   : > { %v993_v8 = vadd.f32 %v992_v6, %v927_v4 }
 0x1f1   : > { %v789_v9 = vpop.xlane.xlu0 %788 }
 0x1f2   : > { %v1026_v18 = vadd.f32 %v993_v8, %v848_v5  ;;  %v817_v10 = vadd.f32 %v789_v9, %v753_v7 }
 0x1f4   : > { %1042 = vst [vmem:[%s2467_s21 + $0x38] sm:$0xff] %v1026_v18 }
 0x1f5   : > { %834 = vst.msk [vmem:[#allocation2 + $0x48] sm:$0xff] %vm824_vm1, %v817_v10 }
 0x1f7   : > { %v930_v19 = vpop.f32.mrf.mxu2  ;;  %v995_v12 = vpop.f32.mrf.mxu3 }
 0x1f8   : > { %v996_v14 = vadd.f32 %v995_v12, %v930_v19 }
 0x1f9   : > { %v792_v15 = vpop.xlane.xlu1 %791 }
 0x1fa   : > { %v1027_v16 = vadd.f32 %v996_v14, %v849_v11  ;;  %v818_v17 = vadd.f32 %v792_v15, %v754_v13 }
 0x1fc   : > { %1043 = vst [vmem:[%s2467_s21 + $0x40] sm:$0xff] %v1027_v16 }
 0x1fd   : > { %835 = vst.msk [vmem:[#allocation2 + $0x50] sm:$0xff] %vm824_vm1, %v818_v17 }
 0x1ff   : > { %v933_v20 = vpop.f32.mrf.mxu2  ;;  %v998_v22 = vpop.f32.mrf.mxu3 }
 0x200   : > { %v999_v24 = vadd.f32 %v998_v22, %v933_v20 }
 0x201   : > { %v795_v25 = vpop.xlane.xlu2 %794 }
 0x202   : > { %v1028_v26 = vadd.f32 %v999_v24, %v850_v21  ;;  %v819_v27 = vadd.f32 %v795_v25, %v755_v23 }
 0x204   : > { %1044 = vst [vmem:[%s2467_s21 + $0x48] sm:$0xff] %v1028_v26 }
 0x205   : > { %836 = vst.msk [vmem:[#allocation2 + $0x58] sm:$0xff] %vm824_vm1, %v819_v27 }
 0x207   : > { %v936_v28 = vpop.f32.mrf.mxu2  ;;  %v1001_v30 = vpop.f32.mrf.mxu3 }
 0x208   : > { %v1002_v32 = vadd.f32 %v1001_v30, %v936_v28 }
 0x209   : > { %v798_v33 = vpop.xlane.xlu0 %797 }
 0x20a   : > { %v1029_v34 = vadd.f32 %v1002_v32, %v851_v29  ;;  %v820_v35 = vadd.f32 %v798_v33, %v756_v31 }
 0x20c   : > { %1045 = vst [vmem:[%s2467_s21 + $0x50] sm:$0xff] %v1029_v34 }
 0x20d   : > { %837 = vst.msk [vmem:[#allocation2 + $0x60] sm:$0xff] %vm824_vm1, %v820_v35 }
 0x20f   : > { %v939_v36 = vpop.f32.mrf.mxu2  ;;  %v1004_v38 = vpop.f32.mrf.mxu3 }
 0x210   : > { %v1005_v40 = vadd.f32 %v1004_v38, %v939_v36 }
 0x211   : > { %v801_v41 = vpop.xlane.xlu1 %800 }
 0x212   : > { %v1030_v42 = vadd.f32 %v1005_v40, %v852_v37  ;;  %v821_v43 = vadd.f32 %v801_v41, %v757_v39 }
 0x214   : > { %1046 = vst [vmem:[%s2467_s21 + $0x58] sm:$0xff] %v1030_v42 }
 0x215   : > { %838 = vst.msk [vmem:[#allocation2 + $0x68] sm:$0xff] %vm824_vm1, %v821_v43 }
 0x217   : > { %v942_v44 = vpop.f32.mrf.mxu2  ;;  %v1007_v46 = vpop.f32.mrf.mxu3 }
 0x218   : > { %v1008_v48 = vadd.f32 %v1007_v46, %v942_v44 }
 0x219   : > { %v804_v49 = vpop.xlane.xlu2 %803 }
 0x21a   : > { %v1031_v50 = vadd.f32 %v1008_v48, %v853_v45  ;;  %v822_v51 = vadd.f32 %v804_v49, %v758_v47 }
 0x21c   : > { %1047 = vst [vmem:[%s2467_s21 + $0x60] sm:$0xff] %v1031_v50 }
 0x21d   : > { %839 = vst.msk [vmem:[#allocation2 + $0x70] sm:$0xff] %vm824_vm1, %v822_v51 }
 0x21f   : > { %v945_v52 = vpop.f32.mrf.mxu2  ;;  %v1010_v54 = vpop.f32.mrf.mxu3 }
 0x220   : > { %v1011_v56 = vadd.f32 %v1010_v54, %v945_v52 }
 0x221   : > { %v807_v57 = vpop.xlane.xlu0 %806 }
 0x222   : > { %v1032_v58 = vadd.f32 %v1011_v56, %v854_v53  ;;  %v823_v59 = vadd.f32 %v807_v57, %v759_v55 }
 0x224   : > { %1048 = vst [vmem:[%s2467_s21 + $0x68] sm:$0xff] %v1032_v58 }
 0x225   : > { %840 = vst.msk [vmem:[#allocation2 + $0x78] sm:$0xff] %vm824_vm1, %v823_v59 }
 0x227   : > { %v948_v60 = vpop.f32.mrf.mxu2  ;;  %v1013_v62 = vpop.f32.mrf.mxu3 }
 0x228   : > { %v1014_v63 = vadd.f32 %v1013_v62, %v948_v60 }
 0x22a   : > { %v1033_v0 = vadd.f32 %v1014_v63, %v855_v61 }
 0x22c   : > { %1049 = vst [vmem:[%s2467_s21 + $0x70] sm:$0xff] %v1033_v0 }
 0x22f   : > { %v951_v1 = vpop.f32.mrf.mxu2  ;;  %v1016_v3 = vpop.f32.mrf.mxu3 }
 0x230   : > { %v1017_v4 = vadd.f32 %v1016_v3, %v951_v1  ;;  %1054 = sbr.rel (%p1638_p12) target bundleno = 787 (0x313), region = 64 }
 0x232   : > { %v1034_v5 = vadd.f32 %v1017_v4, %v856_v2 }
 0x234   : > { %1050 = vst [vmem:[%s2467_s21 + $0x78] sm:$0xff] %v1034_v5 }
 0x235   : > { %v1059_v6 = vld [vmem:[%s2467_s21 + $0x20] sm:$0xff]  ;;  %v2708_v7 = vld [vmem:[%s3045_s30] ss:$0 sm:$0xff]  ;;  %v1057_v9 = vld [vmem:[%s2467_s21 + $0x10] sm:$0xff]  ;;  %v2171_v63 = vmov 0  }
 0x236   : > { %v1111_v8 = vld [vmem:[%s2442_s0 + $0x20] sm:$0xff]  ;;  %v1109_v18 = vld [vmem:[%s2442_s0 + $0x10] sm:$0xff]  ;;  %v1079_v10 = vadd.f32 %v2708_v7, %v1059_v6  ;;  %v1077_v19 = vadd.f32 %v2708_v7, %v1057_v9  ;;  %v1112_v24 = vld [vmem:[%s2442_s0 + $0x28] sm:$0xff]  ;;  %1822 = vset.pattern.permute.xlu2 %v2171_v63  ;;  %1821 = vset.pattern.permute.xlu1 %v2171_v63 }
 0x237   : > { %v1055_v11 = vld [vmem:[%s2467_s21] sm:$0xff]  ;;  %v1060_v13 = vld [vmem:[%s2467_s21 + $0x28] sm:$0xff]  ;;  %v1058_v15 = vld [vmem:[%s2467_s21 + $0x18] sm:$0xff]  ;;  %1823 = vset.pattern.permute.xlu0 %v2171_v63 }
 0x238   : > { %v1107_v12 = vld [vmem:[%s2442_s0] sm:$0xff]  ;;  %v1075_v14 = vadd.f32 %v2708_v7, %v1055_v11  ;;  %v1127_v16 = vsub.f32 %v1079_v10, %v1111_v8  ;;  %1095 = vst [vmem:[%s2467_s21 + $0x20] sm:$0xff] %v1079_v10  ;;  %v1125_v17 = vsub.f32 %v1077_v19, %v1109_v18  ;;  %v1080_v20 = vadd.f32 %v2708_v7, %v1060_v13  ;;  %v1056_v22 = vld [vmem:[%s2467_s21 + $0x8] sm:$0xff]  ;;  %v1110_v25 = vld [vmem:[%s2442_s0 + $0x18] sm:$0xff] }
 0x239   : > { %v1078_v21 = vadd.f32 %v2708_v7, %v1058_v15  ;;  %1093 = vst [vmem:[%s2467_s21 + $0x10] sm:$0xff] %v1077_v19  ;;  %v1076_v26 = vadd.f32 %v2708_v7, %v1056_v22  ;;  %v1063_v27 = vld [vmem:[%s2467_s21 + $0x40] sm:$0xff]  ;;  %v1062_v31 = vld [vmem:[%s2467_s21 + $0x38] sm:$0xff]  ;;  %v1061_v33 = vld [vmem:[%s2467_s21 + $0x30] sm:$0xff] }
 0x23a   : > { %v1123_v23 = vsub.f32 %v1075_v14, %v1107_v12  ;;  %v1143_v28 = vmul.f32 %v1127_v16, %v1127_v16  ;;  %v1141_v29 = vmul.f32 %v1125_v17, %v1125_v17  ;;  %1091 = vst [vmem:[%s2467_s21] sm:$0xff] %v1075_v14  ;;  %v1108_v30 = vld [vmem:[%s2442_s0 + $0x8] sm:$0xff]  ;;  %v1128_v34 = vsub.f32 %v1080_v20, %v1112_v24  ;;  %v1066_v37 = vld [vmem:[%s2467_s21 + $0x58] sm:$0xff]  ;;  %v1065_v40 = vld [vmem:[%s2467_s21 + $0x50] sm:$0xff] }
 0x23b   : > { %1096 = vst [vmem:[%s2467_s21 + $0x28] sm:$0xff] %v1080_v20  ;;  %v1126_v35 = vsub.f32 %v1078_v21, %v1110_v25  ;;  %v1083_v36 = vadd.f32 %v2708_v7, %v1063_v27  ;;  %v1124_v38 = vsub.f32 %v1076_v26, %v1108_v30  ;;  %v1082_v39 = vadd.f32 %v2708_v7, %v1062_v31  ;;  %v1064_v42 = vld [vmem:[%s2467_s21 + $0x48] sm:$0xff]  ;;  %v1069_v44 = vld [vmem:[%s2467_s21 + $0x70] sm:$0xff]  ;;  %v1115_v50 = vld [vmem:[%s2442_s0 + $0x40] sm:$0xff] }
 0x23c   : > { %v1139_v32 = vmul.f32 %v1123_v23, %v1123_v23  ;;  %1163 = vadd.xlane.f32.xlu2 %v1143_v28  ;;  %1159 = vadd.xlane.f32.xlu1 %v1141_v29  ;;  %1094 = vst [vmem:[%s2467_s21 + $0x18] sm:$0xff] %v1078_v21  ;;  %v1081_v41 = vadd.f32 %v2708_v7, %v1061_v33  ;;  %v1068_v48 = vld [vmem:[%s2467_s21 + $0x68] sm:$0xff]  ;;  %v1114_v51 = vld [vmem:[%s2442_s0 + $0x38] sm:$0xff]  ;;  %v1067_v53 = vld [vmem:[%s2467_s21 + $0x60] sm:$0xff] }
 0x23d   : > { %1092 = vst [vmem:[%s2467_s21 + $0x8] sm:$0xff] %v1076_v26  ;;  %v1086_v43 = vadd.f32 %v2708_v7, %v1066_v37  ;;  %v1144_v45 = vmul.f32 %v1128_v34, %v1128_v34  ;;  %v1142_v46 = vmul.f32 %v1126_v35, %v1126_v35  ;;  %v1085_v47 = vadd.f32 %v2708_v7, %v1065_v40  ;;  %v1113_v54 = vld [vmem:[%s2442_s0 + $0x30] sm:$0xff]  ;;  %v1070_v56 = vld [vmem:[%s2467_s21 + $0x78] sm:$0xff]  ;;  %v1116_v5 = vld [vmem:[%s2442_s0 + $0x48] sm:$0xff] }
 0x23e   : > { %1155 = vadd.xlane.f32.xlu0 %v1139_v32  ;;  %1099 = vst [vmem:[%s2467_s21 + $0x40] sm:$0xff] %v1083_v36  ;;  %v1140_v49 = vmul.f32 %v1124_v38, %v1124_v38  ;;  %v1084_v52 = vadd.f32 %v2708_v7, %v1064_v42  ;;  %v1089_v55 = vadd.f32 %v2708_v7, %v1069_v44  ;;  %v1118_v3 = vld [vmem:[%s2442_s0 + $0x58] sm:$0xff]  ;;  %v1117_v4 = vld [vmem:[%s2442_s0 + $0x50] sm:$0xff]  ;;  %v1120_v11 = vld [vmem:[%s2442_s0 + $0x68] sm:$0xff] }
 0x23f   : > { %1098 = vst [vmem:[%s2467_s21 + $0x38] sm:$0xff] %v1082_v39  ;;  %v1088_v57 = vadd.f32 %v2708_v7, %v1068_v48  ;;  %v1131_v58 = vsub.f32 %v1083_v36, %v1115_v50  ;;  %v1130_v59 = vsub.f32 %v1082_v39, %v1114_v51  ;;  %v1087_v60 = vadd.f32 %v2708_v7, %v1067_v53  ;;  %v1121_v19 = vld [vmem:[%s2442_s0 + $0x70] sm:$0xff]  ;;  %v1119_v12 = vld [vmem:[%s2442_s0 + $0x60] sm:$0xff]  ;;  %v1122_v21 = vld [vmem:[%s2442_s0 + $0x78] sm:$0xff] }
 0x240   : > { %1097 = vst [vmem:[%s2467_s21 + $0x30] sm:$0xff] %v1081_v41  ;;  %v1129_v61 = vsub.f32 %v1081_v41, %v1113_v54  ;;  %v1090_v62 = vadd.f32 %v2708_v7, %v1070_v56  ;;  %v1134_v6 = vsub.f32 %v1086_v43, %v1118_v3  ;;  %v1133_v8 = vsub.f32 %v1085_v47, %v1117_v4  ;;  %v1192_v24 = vld [vmem:[#allocation2 + $0x8] sm:$0xff]  ;;  %v1191_v25 = vld [vmem:[#allocation2] sm:$0xff]  ;;  %v1193_v26 = vld [vmem:[#allocation2 + $0x10] sm:$0xff] }
 0x241   : > { %1102 = vst [vmem:[%s2467_s21 + $0x58] sm:$0xff] %v1086_v43  ;;  %v1147_v0 = vmul.f32 %v1131_v58, %v1131_v58  ;;  %v1146_v1 = vmul.f32 %v1130_v59, %v1130_v59  ;;  %v1132_v7 = vsub.f32 %v1084_v52, %v1116_v5  ;;  %v1137_v13 = vsub.f32 %v1089_v55, %v1121_v19  ;;  %v1194_v27 = vld [vmem:[#allocation2 + $0x18] sm:$0xff]  ;;  %v1195_v28 = vld [vmem:[#allocation2 + $0x20] sm:$0xff]  ;;  %v1200_v29 = vld [vmem:[#allocation2 + $0x48] sm:$0xff] }
 0x242   : > { %1101 = vst [vmem:[%s2467_s21 + $0x50] sm:$0xff] %v1085_v47  ;;  %v1145_v2 = vmul.f32 %v1129_v61, %v1129_v61  ;;  %v1150_v9 = vmul.f32 %v1134_v6, %v1134_v6  ;;  %v1149_v18 = vmul.f32 %v1133_v8, %v1133_v8  ;;  %v1136_v14 = vsub.f32 %v1088_v57, %v1120_v11  ;;  %v1196_v30 = vld [vmem:[#allocation2 + $0x28] sm:$0xff]  ;;  %v1197_v31 = vld [vmem:[#allocation2 + $0x30] sm:$0xff]  ;;  %v1203_v32 = vld [vmem:[#allocation2 + $0x60] sm:$0xff] }
 0x243   : > { %1100 = vst [vmem:[%s2467_s21 + $0x48] sm:$0xff] %v1084_v52  ;;  %v1148_v10 = vmul.f32 %v1132_v7, %v1132_v7  ;;  %v1135_v15 = vsub.f32 %v1087_v60, %v1119_v12  ;;  %v1153_v16 = vmul.f32 %v1137_v13, %v1137_v13  ;;  %v1138_v22 = vsub.f32 %v1090_v62, %v1122_v21  ;;  %v1198_v33 = vld [vmem:[#allocation2 + $0x38] sm:$0xff]  ;;  %v1199_v34 = vld [vmem:[#allocation2 + $0x40] sm:$0xff]  ;;  %v1201_v36 = vld [vmem:[#allocation2 + $0x50] sm:$0xff] }
 0x244   : > { %1165 = vadd.xlane.f32.xlu2 %v1144_v45  ;;  %1161 = vadd.xlane.f32.xlu1 %v1142_v46  ;;  %1105 = vst [vmem:[%s2467_s21 + $0x70] sm:$0xff] %v1089_v55  ;;  %v1152_v17 = vmul.f32 %v1136_v14, %v1136_v14  ;;  %v1206_v35 = vld [vmem:[#allocation2 + $0x78] sm:$0xff]  ;;  %v1204_v38 = vld [vmem:[#allocation2 + $0x68] sm:$0xff]  ;;  %v1205_v39 = vld [vmem:[#allocation2 + $0x70] sm:$0xff]  ;;  %v1187_v51 = vlaneseq }
 0x245   : > { %1104 = vst [vmem:[%s2467_s21 + $0x68] sm:$0xff] %v1088_v57  ;;  %v1151_v20 = vmul.f32 %v1135_v15, %v1135_v15  ;;  %v1154_v23 = vmul.f32 %v1138_v22, %v1138_v22  ;;  %v1202_v37 = vld [vmem:[#allocation2 + $0x58] sm:$0xff] }
 0x246   : > { %1157 = vadd.xlane.f32.xlu0 %v1140_v49  ;;  %1103 = vst [vmem:[%s2467_s21 + $0x60] sm:$0xff] %v1087_v60  ;;  %v2779_v53 = vand.u32 127, %v1187_v51 }
 0x247   : > { %1106 = vst [vmem:[%s2467_s21 + $0x78] sm:$0xff] %v1090_v62 }
 0x248   : > { %vm1190_vm2 = vcmp.eq.s32.totalorder %v2779_v53, 1  ;;  %vm1189_vm3 = vcmp.eq.s32.totalorder %v2779_v53, 0 }
 0x24c   : > { %1171 = vadd.xlane.f32.xlu2 %v1147_v0  ;;  %1169 = vadd.xlane.f32.xlu1 %v1146_v1 }
 0x24e   : > { %1167 = vadd.xlane.f32.xlu0 %v1145_v2 }
 0x254   : > { %1177 = vadd.xlane.f32.xlu2 %v1150_v9  ;;  %1175 = vadd.xlane.f32.xlu1 %v1149_v18 }
 0x256   : > { %1173 = vadd.xlane.f32.xlu0 %v1148_v10 }
 0x25c   : > { %1183 = vadd.xlane.f32.xlu2 %v1153_v16  ;;  %1181 = vadd.xlane.f32.xlu1 %v1152_v17 }
 0x25e   : > { %1179 = vadd.xlane.f32.xlu0 %v1151_v20 }
 0x266   : > { %1185 = vadd.xlane.f32.xlu0 %v1154_v23 }
 0x274   : > { %1214 = vperm.xlu2 %1822, %v1192_v24  }
 0x275   : > { %1209 = vperm.xlu1 %1821, %v1191_v25  }
 0x27a   : > { %1219 = vperm.xlu0 %1823, %v1193_v26  }
 0x27c   : > { %1224 = vperm.xlu2 %1822, %v1194_v27  }
 0x27d   : > { %1229 = vperm.xlu1 %1821, %v1195_v28  }
 0x282   : > { %1254 = vperm.xlu0 %1823, %v1200_v29  }
 0x284   : > { %1234 = vperm.xlu2 %1822, %v1196_v30  }
 0x285   : > { %1239 = vperm.xlu1 %1821, %v1197_v31  }
 0x28a   : > { %1269 = vperm.xlu0 %1823, %v1203_v32  }
 0x28c   : > { %1244 = vperm.xlu2 %1822, %v1198_v33  }
 0x28d   : > { %1249 = vperm.xlu1 %1821, %v1199_v34  }
 0x292   : > { %1284 = vperm.xlu0 %1823, %v1206_v35  }
 0x294   : > { %1259 = vperm.xlu2 %1822, %v1201_v36  }
 0x295   : > { %1264 = vperm.xlu1 %1821, %v1202_v37  }
 0x29c   : > { %1274 = vperm.xlu2 %1822, %v1204_v38  }
 0x29d   : > { %1279 = vperm.xlu1 %1821, %v1205_v39  }
 0x2af   : > { %v1164_v40 = vpop.xlane.xlu2 %1163  ;;  %v1160_v42 = vpop.xlane.xlu1 %1159 }
 0x2b1   : > { %v1156_v41 = vpop.xlane.xlu0 %1155 }
 0x2b7   : > { %v1166_v43 = vpop.xlane.xlu2 %1165  ;;  %v1162_v46 = vpop.xlane.xlu1 %1161 }
 0x2b9   : > { %v1158_v44 = vpop.xlane.xlu0 %1157 }
 0x2bf   : > { %v2773_v45 = vpop.xlane.xlu2 %1171  ;;  %v1170_v49 = vpop.xlane.xlu1 %1169 }
 0x2c1   : > { %v1168_v47 = vpop.xlane.xlu0 %1167 }
 0x2c7   : > { %v2775_v48 = vpop.xlane.xlu2 %1177  ;;  %v1176_v54 = vpop.xlane.xlu1 %1175 }
 0x2c9   : > { %v1174_v50 = vpop.xlane.xlu0 %1173 }
 0x2cf   : > { %v2777_v52 = vpop.xlane.xlu2 %1183  ;;  %v1182_v59 = vpop.xlane.xlu1 %1181 }
 0x2d1   : > { %v1180_v56 = vpop.xlane.xlu0 %1179 }
 0x2d7   : > { %v1215_v55 = vpop.permute.xlu2 %1214 }
 0x2d8   : > { %v1288_v57 = vsel %vm1190_vm2, %v1215_v55, 0.0 }
 0x2d9   : > { %v1304_v58 = vsel %vm1189_vm3, %v1158_v44, %v1288_v57  ;;  %v1186_v63 = vpop.xlane.xlu0 %1185 }
 0x2da   : > { %1320 = vst [vmem:[%s2471_s9 + $0x8] sm:$0xff] %v1304_v58 }
 0x2df   : > { %v1225_v60 = vpop.permute.xlu2 %1224 }
 0x2e0   : > { %v1290_v61 = vsel %vm1190_vm2, %v1225_v60, 0.0 }
 0x2e1   : > { %v1306_v62 = vsel %vm1189_vm3, %v1162_v46, %v1290_v61 }
 0x2e2   : > { %1322 = vst [vmem:[%s2471_s9 + $0x18] sm:$0xff] %v1306_v62 }
 0x2e7   : > { %v1235_v0 = vpop.permute.xlu2 %1234  ;;  %v1210_v1 = vpop.permute.xlu1 %1209 }
 0x2e8   : > { %v1292_v2 = vsel %vm1190_vm2, %v1235_v0, 0.0  ;;  %v1287_v3 = vsel %vm1190_vm2, %v1210_v1, 0.0 }
 0x2e9   : > { %v1308_v4 = vsel %vm1189_vm3, %v1166_v43, %v1292_v2  ;;  %v1303_v5 = vsel %vm1189_vm3, %v1156_v41, %v1287_v3 }
 0x2ea   : > { %1324 = vst [vmem:[%s2471_s9 + $0x28] sm:$0xff] %v1308_v4 }
 0x2eb   : > { %1319 = vst [vmem:[%s2471_s9] sm:$0xff] %v1303_v5 }
 0x2ec   : > { %v1220_v6 = vpop.permute.xlu0 %1219 }
 0x2ed   : > { %v1289_v8 = vsel %vm1190_vm2, %v1220_v6, 0.0 }
 0x2ee   : > { %v1305_v7 = vsel %vm1189_vm3, %v1160_v42, %v1289_v8 }
 0x2ef   : > { %1321 = vst [vmem:[%s2471_s9 + $0x10] sm:$0xff] %v1305_v7  ;;  %v1245_v9 = vpop.permute.xlu2 %1244  ;;  %v1230_v18 = vpop.permute.xlu1 %1229 }
 0x2f0   : > { %v1294_v10 = vsel %vm1190_vm2, %v1245_v9, 0.0  ;;  %v1291_v19 = vsel %vm1190_vm2, %v1230_v18, 0.0 }
 0x2f1   : > { %v1310_v11 = vsel %vm1189_vm3, %v1170_v49, %v1294_v10  ;;  %v1307_v12 = vsel %vm1189_vm3, %v1164_v40, %v1291_v19 }
 0x2f2   : > { %1326 = vst [vmem:[%s2471_s9 + $0x38] sm:$0xff] %v1310_v11 }
 0x2f3   : > { %1323 = vst [vmem:[%s2471_s9 + $0x20] sm:$0xff] %v1307_v12 }
 0x2f4   : > { %v1255_v13 = vpop.permute.xlu0 %1254 }
 0x2f5   : > { %v1296_v14 = vsel %vm1190_vm2, %v1255_v13, 0.0 }
 0x2f6   : > { %v1312_v15 = vsel %vm1189_vm3, %v1174_v50, %v1296_v14 }
 0x2f7   : > { %1328 = vst [vmem:[%s2471_s9 + $0x48] sm:$0xff] %v1312_v15  ;;  %v1260_v16 = vpop.permute.xlu2 %1259  ;;  %v1240_v17 = vpop.permute.xlu1 %1239 }
 0x2f8   : > { %v1297_v20 = vsel %vm1190_vm2, %v1260_v16, 0.0  ;;  %v1293_v21 = vsel %vm1190_vm2, %v1240_v17, 0.0 }
 0x2f9   : > { %v1313_v22 = vsel %vm1189_vm3, %v1176_v54, %v1297_v20  ;;  %v1309_v23 = vsel %vm1189_vm3, %v1168_v47, %v1293_v21 }
 0x2fa   : > { %1329 = vst [vmem:[%s2471_s9 + $0x50] sm:$0xff] %v1313_v22 }
 0x2fb   : > { %1325 = vst [vmem:[%s2471_s9 + $0x30] sm:$0xff] %v1309_v23 }
 0x2fc   : > { %v1270_v24 = vpop.permute.xlu0 %1269 }
 0x2fd   : > { %v1299_v25 = vsel %vm1190_vm2, %v1270_v24, 0.0 }
 0x2fe   : > { %v1315_v26 = vsel %vm1189_vm3, %v1180_v56, %v1299_v25 }
 0x2ff   : > { %1331 = vst [vmem:[%s2471_s9 + $0x60] sm:$0xff] %v1315_v26  ;;  %v1275_v27 = vpop.permute.xlu2 %1274  ;;  %v1250_v28 = vpop.permute.xlu1 %1249 }
 0x300   : > { %v1300_v29 = vsel %vm1190_vm2, %v1275_v27, 0.0  ;;  %v1295_v30 = vsel %vm1190_vm2, %v1250_v28, 0.0 }
 0x301   : > { %v1316_v31 = vsel %vm1189_vm3, %v1182_v59, %v1300_v29  ;;  %v1311_v32 = vsel %vm1189_vm3, %v2773_v45, %v1295_v30 }
 0x302   : > { %1332 = vst [vmem:[%s2471_s9 + $0x68] sm:$0xff] %v1316_v31 }
 0x303   : > { %1327 = vst [vmem:[%s2471_s9 + $0x40] sm:$0xff] %v1311_v32 }
 0x304   : > { %v1285_v33 = vpop.permute.xlu0 %1284 }
 0x305   : > { %v1302_v34 = vsel %vm1190_vm2, %v1285_v33, 0.0 }
 0x306   : > { %v1318_v35 = vsel %vm1189_vm3, %v1186_v63, %v1302_v34 }
 0x307   : > { %1334 = vst [vmem:[%s2471_s9 + $0x78] sm:$0xff] %v1318_v35  ;;  %v1265_v36 = vpop.permute.xlu1 %1264 }
 0x308   : > { %v1298_v37 = vsel %vm1190_vm2, %v1265_v36, 0.0 }
 0x309   : > { %v1314_v38 = vsel %vm1189_vm3, %v2775_v48, %v1298_v37 }
 0x30a   : > { %1330 = vst [vmem:[%s2471_s9 + $0x58] sm:$0xff] %v1314_v38 }
 0x30f   : > { %v1280_v39 = vpop.permute.xlu1 %1279 }
 0x310   : > { %v1301_v40 = vsel %vm1190_vm2, %v1280_v39, 0.0 }
 0x311   : > { %v1317_v41 = vsel %vm1189_vm3, %v2777_v52, %v1301_v40 }
 0x312   : > { %1333 = vst [vmem:[%s2471_s9 + $0x70] sm:$0xff] %v1317_v41 }
 0x313 PF: > { %s3046_s0 = sld [smem:[#allocation25_spill]]  ;;  %s1378_s15 = sshll.u32 %s2469_s7, 4  ;;  %s1379_s15 = int_to_ptr.vmem [resolvable:$true] %s1378_s15 }
 0x314   : > { %s3047_s17 = sld [smem:[#allocation26_spill]]  ;;  %s2874_s6 = scalar_lea.sflag [#allocation13], %s370_s5 }
 0x315   : > { %s3048_s27 = sld [smem:[#allocation42_spill]] }
 0x319   : > { %s1645_s19 = sshll.u32 %s3046_s0, 1 }
 0x31a   : > { %s1656_s29 = sshll.u32 %s3047_s17, 6 }
 0x31b   : > { %s1375_s10 = sadd.s32 %s1656_s29, %s1645_s19  ;;  %s3049_s4 = smov %s3048_s27 }
 0x31c   : > { %s1647_s24 = sshll.u32 %s1375_s10, 3  ;;  %s1965_s19 = scalar_lea.hbm %s3049_s4, 1024 }
 0x31d   : > { %s1377_s18 = scalar_lea.hbm %s3048_s27, %s1647_s24 }
 0x31e   : > { %s1380_s1 = sshll.u32 %s1377_s18, 4  ;;  %s1381_s1 = int_to_ptr.hbm [resolvable:$true] %s1380_s1 }
 0x31f   : > { %s1959_s13 = sshra.s32 %s1381_s1, 4  ;;  %s1960_s13 = int_to_ptr.hbm [resolvable:$true] %s1959_s13 }
 0x320   : > { %s1961_s30 = scalar_lea.hbm %s1960_s13, 256  ;;  %p1966_p2 = scmp.lt.s32.totalorder %s1960_s13, %s3049_s4 }
 0x321   : > { %p1962_p4 = scmp.ne.s32.totalorder %s1960_s13, %s1961_s30  ;;  %p1967_p13 = scmp.lt.s32.totalorder %s1965_s19, %s1961_s30 }
 0x323   : > { %p1963_p0 = pnand %p1962_p4, %p2401_p7  ;;  %p1968_p3 = por %p1967_p13, %p1966_p2 }
 0x325   : > { %p1964_p9 = pneg %p1963_p0 }
 0x327   : > { %p1969_p11 = pnand %p1968_p3, %p1964_p9 }
 0x329   : > { %1972 = shalt.err (!%p1969_p11)
}
 0x32a   : > { %s2172_s16 = smov 256   ;;  %s2173_s5 = smov 512  }
 0x32b   : > { %s2174_s24 = smov 16   ;;  %s1655_s23 = sshll.u32 %s3047_s17, 7 }
 0x32c   : > { %1667 = dma.vmem_to_hbm [thread:$0]  (%p2401_p7), %s1379_s15, 4096, %s1381_s1, %s2874_s6, %s2172_s16, %s2173_s5, %s2174_s24  }
 0x32d   : > { %s1358_s20 = sshll.u32 %s2467_s21, 4  ;;  %s3050_s13 = sld [smem:[#allocation41_spill]]  ;;  %s1359_s20 = int_to_ptr.vmem [resolvable:$true] %s1358_s20 }
 0x32e   : > { %s1336_s19 = scalar_lea.sflag [#allocation5], %s2438_s26 }
 0x333   : > { %s3051_s7 = smov %s3050_s13  ;;  %s1357_s30 = scalar_lea.hbm %s3050_s13, %s1655_s23 }
 0x334   : > { %s1360_s0 = sshll.u32 %s1357_s30, 4  ;;  %s1993_s17 = scalar_lea.hbm %s3051_s7, 256  ;;  %s1361_s0 = int_to_ptr.hbm [resolvable:$true] %s1360_s0 }
 0x335   : > { %s1987_s29 = sshra.s32 %s1361_s0, 4  ;;  %s1988_s29 = int_to_ptr.hbm [resolvable:$true] %s1987_s29 }
 0x336   : > { %s1989_s10 = scalar_lea.hbm %s1988_s29, 128  ;;  %p1994_p7 = scmp.lt.s32.totalorder %s1988_s29, %s3051_s7 }
 0x337   : > { %p1990_p5 = scmp.ne.s32.totalorder %s1988_s29, %s1989_s10  ;;  %p1995_p4 = scmp.lt.s32.totalorder %s1993_s17, %s1989_s10 }
 0x339   : > { %p1991_p8 = pnand %p1990_p5, %p2382_p1  ;;  %p1996_p0 = por %p1995_p4, %p1994_p7 }
 0x33b   : > { %p1992_p12 = pneg %p1991_p8 }
 0x33d   : > { %p1997_p9 = pnand %p1996_p0, %p1992_p12 }
 0x33f   : > { %2000 = shalt.err (!%p1997_p9)
}
 0x340   : > { %s2175_s26 = smov 128   ;;  %s2176_s1 = smov 8  }
 0x341   : > { %1666 = dma.vmem_to_hbm [thread:$0]  (%p2382_p1), %s1359_s20, 2048, %s1361_s0, %s1336_s19, %s2175_s26, %s2175_s26, %s2176_s1  }
 0x342   : > { %s3052_s24 = sld [smem:[#allocation43_spill]]  ;;  %s1395_s27 = sshll.u32 %s2471_s9, 4  ;;  %s1396_s27 = int_to_ptr.vmem [resolvable:$true] %s1395_s27 }
 0x348   : > { %s3053_s18 = smov %s3052_s24  ;;  %s1394_s2 = scalar_lea.hbm %s3052_s24, %s1655_s23 }
 0x349   : > { %s1397_s13 = sshll.u32 %s1394_s2, 4  ;;  %s2021_s17 = scalar_lea.hbm %s3053_s18, 256  ;;  %s1398_s13 = int_to_ptr.hbm [resolvable:$true] %s1397_s13 }
 0x34a   : > { %s2015_s30 = sshra.s32 %s1398_s13, 4  ;;  %s2016_s30 = int_to_ptr.hbm [resolvable:$true] %s2015_s30 }
 0x34b   : > { %s2017_s29 = scalar_lea.hbm %s2016_s30, 128  ;;  %p2022_p11 = scmp.lt.s32.totalorder %s2016_s30, %s3053_s18 }
 0x34c   : > { %p2018_p2 = scmp.ne.s32.totalorder %s2016_s30, %s2017_s29  ;;  %p2023_p5 = scmp.lt.s32.totalorder %s2021_s17, %s2017_s29 }
 0x34e   : > { %p2019_p13 = pnand %p2018_p2, %p2382_p1  ;;  %p2024_p8 = por %p2023_p5, %p2022_p11 }
 0x350   : > { %p2020_p3 = pneg %p2019_p13 }
 0x352   : > { %p2025_p12 = pnand %p2024_p8, %p2020_p3 }
 0x354   : > { %2028 = shalt.err (!%p2025_p12)
}
 0x355   : > { %1668 = dma.vmem_to_hbm [thread:$0]  (%p2382_p1), %s1396_s27, 2048, %s1398_s13, %s2874_s6, %s2175_s26, %s2175_s26, %s2176_s1  }
 0x356 PF: > { %s3054_s9 = sld [smem:[#allocation23_spill]]  ;;  %p1696_p7 = scmp.ge.s32.totalorder %s2163_s14, 2 }
 0x358   : > { %p1686_p4 = pnand %p1696_p7, %p2389_p6 }
 0x35a   : > { %p1687_p0 = pneg %p1686_p4 }
 0x35c   : > { %s1412_s19 = sand.u32 1, %s3054_s9  }
 0x35d   : > { %s1413_s21 = scalar_lea.sflag [#allocation5], %s1412_s19 }
 0x35e   : > { %2098 = dma.done.wait (%p1687_p0), %s1413_s21, 2048  }
 0x35f   : > { %2100 = vsyncadd (%p1687_p0), %s1413_s21, 4294965248  ;;  %s3056_s15 = sadd.s32 4294967294, %s2163_s14   ;;  %p1689_p9 = pnand %p1696_p7, %p2405_p10 }
 0x360   : > { %s1422_s5 = sand.u32 1, %s3056_s15  }
 0x361   : > { %p1690_p2 = pneg %p1689_p9  ;;  %s1423_s22 = scalar_lea.sflag [#allocation13], %s1422_s5 }
 0x363   : > { %2102 = dma.done.wait (%p1690_p2), %s1423_s22, 4096  }
 0x364   : > { %2104 = vsyncadd (%p1690_p2), %s1423_s22, 4294963200 }
 0x365   : > { %2106 = dma.done.wait (%p1687_p0), %s1423_s22, 2048  }
 0x366   : > { %2108 = vsyncadd (%p1687_p0), %s1423_s22, 4294965248  ;;  %s33_s14 = sadd.s32 1, %s2163_s14   ;;  %s3059_s26 = sld [smem:[#allocation21_spill]] }
 0x367   : > { %p2927_p1 = scmp.ge.s32.totalorder %s33_s14, 6   ;;  %s3060_s1 = sld [smem:[#allocation35_spill]] }
 0x368   : > { %s3061_s2 = sld [smem:[#allocation22_spill]]  ;;  %s3068_s24 = smov %s2115_s25 }
 0x369   : > { %s3062_s29 = sld [smem:[#allocation32_spill]]  ;;  %s3071_s27 = smov %s2127_s28 }
 0x36a   : > { %s3063_s13 = sld [smem:[#allocation24_spill]]  ;;  %s3073_s30 = smov %s2139_s8 }
 0x36b   : > { %s3064_s9 = sld [smem:[#allocation33_spill]]  ;;  %s3075_s10 = smov %s2155_s12 }
 0x36c   : > { %s3065_s11 = sld [smem:[#allocation27_spill]]  ;;  %s3069_s25 = smov %s3059_s26 }
 0x36d   : > { %s3066_s17 = sld [smem:[#allocation29_spill]]  ;;  %s3070_s26 = smov %s3060_s1 }
 0x36e   : > { %s3067_s20 = sld [smem:[#allocation31_spill]]  ;;  %s3072_s28 = smov %s3061_s2 }
 0x370   : > { %s3074_s8 = smov %s3063_s13  ;;  %32 = sbr.rel (!%p2927_p1) target bundleno = 24 (0x18), region = 162 }
 0x373   : > { %s3076_s12 = smov %s3066_s17 }
 0x374   : > { %s3077_s13 = smov %s3067_s20 }
 0x375   :  { %1439 = vsyncpa [#allocation4], 1 }
 0x376   :  { %1441 = vsyncpa [#allocation4 + $0x1], 1 }
 0x377   :  { %1442 = vsyncpa [#allocation7], 1 }
 0x378   :  { %1444 = vsyncpa [#allocation7 + $0x1], 1 }
 0x379   :  { %1445 = vsyncpa [#allocation10], 1 }
 0x37a   :  { %1447 = vsyncpa [#allocation10 + $0x1], 1 }
 0x37b   :  { %1448 = vsyncpa [#allocation5], 1 }
 0x37c   :  { %1450 = vsyncpa [#allocation5 + $0x1], 1 }
 0x37d   :  { %1451 = vsyncpa [#allocation13], 1 }
 0x37e   :  { %1453 = vsyncpa [#allocation13 + $0x1], 1 }

</bundles_post_ra>
